<compile_context>
chip_gen: v6e
topology: v6e:2x2x1
jax: 0.10.0
libtpu: 0.0.40
codegen_flags: <defaults>
</compile_context>

<pallas_src>
import jax
import jax.numpy as jnp
from jax.experimental import pallas as pl
from jax.experimental.pallas import tpu as pltpu

# Module hyper-parameters hard-coded in SphereProjectionModel.__init__
NUM_INPUT_FEATURES = 3
NUM_FREQS = 2
MAX_FREQ_LOG2 = 2
# freq_bands = 2 ** linspace(0, 2, 2) = [1., 4.]
FREQ_BANDS = (1.0, 4.0)
PE_DIM = NUM_INPUT_FEATURES * NUM_FREQS * 2   # 12 (torch encoder input width)
PE_PAD_DIM = 16                               # padded K so sin/cos rows stay tile-local

COMPUTE_DTYPE = jnp.bfloat16                  # MXU operand dtype (f32 accumulation)
VMEM_LIMIT_BYTES = 32 * 1024 * 1024           # explicit (v5e default is only 16 MiB)

# Kernel encoding row order (rows of the padded (16, T) enc scratch):
#   rows 0..2  : sin(f0*x0) sin(f0*x1) sin(f0*x2)
#   rows 3..5  : sin(f1*x0) sin(f1*x1) sin(f1*x2)
#   rows 6..7  : zero padding
#   rows 8..10 : cos(f0*x0) cos(f0*x1) cos(f0*x2)
#   rows 11..13: cos(f1*x0) cos(f1*x1) cos(f1*x2)
#   rows 14..15: zero padding
# Torch column order (per feature i): [sin f0, sin f1, cos f0, cos f1] at 4*i + j.
# PERM[r] = torch enc column that (unpadded) kernel row r corresponds to.
PERM = (0, 4, 8, 1, 5, 9, 2, 6, 10, 3, 7, 11)


def sphere_projection_kernel(pts_ref,
                             w1_ref, b1_ref,
                             w2_ref, b2_ref,
                             w3_ref, b3_ref,
                             w4_ref, b4_ref,
                             out_ref, enc_ref):
    x = pts_ref[...]                                             # (3, T) f32
    t = x.shape[1]

    # --- NeRF positional encoding: row-sliced writes into padded scratch ---
    # sin rows live in sublane tile 0 (rows 0:6), cos rows in tile 1 (rows 8:14);
    # no store straddles an 8-row boundary and no in-kernel concatenates are used.
    for fi, f in enumerate(FREQ_BANDS):
        xf = f * x                                               # (3, T)
        enc_ref[3 * fi:3 * (fi + 1), :] = jnp.sin(xf)
        enc_ref[8 + 3 * fi:8 + 3 * (fi + 1), :] = jnp.cos(xf)
    # Pad rows: matching W1 columns are zero, but scratch is uninitialized (could be
    # NaN) and it is per-core on v7x megacore, so clear them every grid step.
    zpad = jnp.zeros((2, t), jnp.float32)
    enc_ref[6:8, :] = zpad
    enc_ref[14:16, :] = zpad

    enc = enc_ref[...].astype(COMPUTE_DTYPE)                     # (16, T) bf16

    # --- encoder: Linear(12->H) -> ReLU -> Linear(H->H) -> ReLU ---
    h = jnp.dot(w1_ref[...], enc, preferred_element_type=jnp.float32) + b1_ref[...]
    h = jnp.maximum(h, 0.0).astype(COMPUTE_DTYPE)
    h = jnp.dot(w2_ref[...], h, preferred_element_type=jnp.float32) + b2_ref[...]
    h = jnp.maximum(h, 0.0).astype(COMPUTE_DTYPE)

    # rotation_matrix_layer: computed in the PyTorch forward but never returned and
    # unused by normalized_points -> elided (dead code).
    # TODO(synk): expose the 3x3 rotation head as a second output if ever needed.

    # --- decoder: Linear(H->H) -> ReLU -> Linear(H->out_dim) ---
    d = jnp.dot(w3_ref[...], h, preferred_element_type=jnp.float32) + b3_ref[...]
    d = jnp.maximum(d, 0.0).astype(COMPUTE_DTYPE)
    out_ref[...] = (jnp.dot(w4_ref[...], d, preferred_element_type=jnp.float32)
                    + b4_ref[...]).astype(out_ref.dtype)


def _pick_tile(n, max_tile=8192, min_tile=256, lane_multiple=256):
    """Big enough to amortize ~0.35us/grid-step overhead, multiple of 256 for the
    MXU lane width, and >=2 tiles whenever possible so both v7x TCs get work."""
    half = pl.cdiv(n, 2)
    tile = pl.cdiv(half, lane_multiple) * lane_multiple
    return max(min_tile, min(max_tile, tile))


def sphere_projection_forward_cn(points_cn, params, tile_n=None):
    """Channel-major entry: points_cn (3, N) f32 -> (out_dim, N) f32.

    No HBM-side transposes, padding, or slicing: the grid is ragged and the
    boundary block's out-of-range columns are dropped on writeback (each output
    column depends only on its own input column, so this is safe)."""
    c, n = points_cn.shape
    assert c == NUM_INPUT_FEATURES
    hidden = params["w1"].shape[1]
    out_dim = params["w4"].shape[1]

    if tile_n is None:
        tile_n = _pick_tile(n)
    n_tiles = pl.cdiv(n, tile_n)

    # Pre-transpose weights (torch layout w:(in,out) -> (out,in)), permute W1 rows
    # to the kernel enc order, zero-pad to K=16, cast matmul operands to bf16.
    w1p = params["w1"].T[:, list(PERM)]                           # (H, 12)
    w1_pad = jnp.zeros((hidden, PE_PAD_DIM), jnp.float32)
    w1_pad = w1_pad.at[:, 0:6].set(w1p[:, 0:6]).at[:, 8:14].set(w1p[:, 6:12])
    w1t = w1_pad.astype(COMPUTE_DTYPE)
    w2t = params["w2"].T.astype(COMPUTE_DTYPE)                    # (H, H)
    w3t = params["w3"].T.astype(COMPUTE_DTYPE)                    # (H, H)
    w4t = params["w4"].T.astype(COMPUTE_DTYPE)                    # (out, H)
    b1t = params["b1"].T.astype(jnp.float32)                      # (H, 1)
    b2t = params["b2"].T.astype(jnp.float32)
    b3t = params["b3"].T.astype(jnp.float32)
    b4t = params["b4"].T.astype(jnp.float32)                      # (out, 1)

    # Points / output tiled along the lane (point) axis; weights & biases are single
    # whole-array blocks that stay VMEM-resident across grid steps.
    pts_spec = pl.BlockSpec((NUM_INPUT_FEATURES, tile_n), lambda i: (0, i))
    out_spec = pl.BlockSpec((out_dim, tile_n), lambda i: (0, i))

    def resident(shape):
        return pl.BlockSpec(shape, lambda i: (0, 0))

    weight_bytes = 2 * (hidden * PE_PAD_DIM + 2 * hidden * hidden + out_dim * hidden)
    cost = pl.CostEstimate(
        flops=int(2 * n * (PE_PAD_DIM * hidden + 2 * hidden * hidden
                           + hidden * out_dim)),
        transcendentals=int(PE_DIM * n),
        bytes_accessed=int(4 * n * (NUM_INPUT_FEATURES + out_dim) + weight_bytes),
    )

    return pl.pallas_call(
        sphere_projection_kernel,
        out_shape=jax.ShapeDtypeStruct((out_dim, n), jnp.float32),
        grid=(n_tiles,),
        in_specs=[
            pts_spec,
            resident((hidden, PE_PAD_DIM)), resident((hidden, 1)),
            resident((hidden, hidden)), resident((hidden, 1)),
            resident((hidden, hidden)), resident((hidden, 1)),
            resident((out_dim, hidden)), resident((out_dim, 1)),
        ],
        out_specs=out_spec,
        scratch_shapes=[pltpu.VMEM((PE_PAD_DIM, tile_n), jnp.float32)],
        compiler_params=pltpu.CompilerParams(
            dimension_semantics=("parallel",),
            vmem_limit_bytes=VMEM_LIMIT_BYTES),
        cost_estimate=cost,
    )(points_cn, w1t, b1t, w2t, b2t, w3t, b3t, w4t, b4t)


def sphere_projection_forward(points_nc, params, tile_n=None):
    """Module-native row-major interface: (N, 3) -> (N, out_dim).

    The two transposes here are XLA layout ops outside the kernel; prefer
    sphere_projection_forward_cn (channel-major end-to-end) in a real pipeline."""
    return sphere_projection_forward_cn(points_nc.T, params, tile_n=tile_n).T


def reference_forward(points, p):
    """Pure-JAX f32 mirror of the PyTorch forward (for correctness checking)."""
    freq = jnp.asarray(FREQ_BANDS, jnp.float32)[None, None, :]    # (1, 1, 2)
    x = points[:, :, None]                                        # (N, 3, 1)
    enc = jnp.concatenate([jnp.sin(freq * x), jnp.cos(freq * x)], axis=-1)  # (N,3,4)
    enc = enc.reshape(points.shape[0], -1)                        # (N, 12)
    h = jax.nn.relu(enc @ p["w1"] + p["b1"])
    h = jax.nn.relu(h @ p["w2"] + p["b2"])
    _rot = (h @ p["wr"] + p["br"]).reshape(-1, 3, 3)              # computed, unused
    d = jax.nn.relu(h @ p["w3"] + p["b3"])
    return d @ p["w4"] + p["b4"]


if __name__ == "__main__":
    hidden_dim, output_dim = 32, 3
    n_points = 777   # exercises a multi-step grid (2 tiles) and a ragged final tile

    key = jax.random.PRNGKey(0)
    keys = jax.random.split(key, 11)

    def linear_params(kw, kb, fan_in, fan_out):
        w = jax.random.normal(kw, (fan_in, fan_out), jnp.float32) * 0.1
        b = jax.random.normal(kb, (1, fan_out), jnp.float32) * 0.1
        return w, b

    w1, b1 = linear_params(keys[0], keys[1], PE_DIM, hidden_dim)
    w2, b2 = linear_params(keys[2], keys[3], hidden_dim, hidden_dim)
    wr, br = linear_params(keys[4], keys[5], hidden_dim, 9)       # rotation head
    w3, b3 = linear_params(keys[6], keys[7], hidden_dim, hidden_dim)
    w4, b4 = linear_params(keys[8], keys[9], hidden_dim, output_dim)
    params = dict(w1=w1, b1=b1, w2=w2, b2=b2, wr=wr, br=br,
                  w3=w3, b3=b3, w4=w4, b4=b4)

    # Native channel-major layout: no layout round trips anywhere in the hot path.
    points_cn = jax.random.normal(keys[10], (NUM_INPUT_FEATURES, n_points),
                                  jnp.float32)

    out_cn = jax.block_until_ready(sphere_projection_forward_cn(points_cn, params))
    assert out_cn.shape == (output_dim, n_points)

    ref = reference_forward(points_cn.T, params)                  # exact f32 reference
    # bf16 MXU operands with f32 accumulation -> loose-but-meaningful tolerance.
    assert jnp.allclose(out_cn.T, ref, atol=3e-2, rtol=3e-2), "channel-major mismatch"

    # Module-native (N, 3) convenience wrapper.
    out_nc = jax.block_until_ready(sphere_projection_forward(points_cn.T, params))
    assert out_nc.shape == (n_points, output_dim)
    assert jnp.allclose(out_nc, ref, atol=3e-2, rtol=3e-2), "row-major mismatch"

    print("KERNEL_OK")
</pallas_src>

<mosaic_0001>
module attributes {stable_mosaic.version = 11 : i64} {
  func.func @sphere_projection_kernel(%arg0: i32, %arg1: memref<3x512xf32, #tpu.memory_space<vmem>>, %arg2: memref<32x16xbf16, #tpu.memory_space<vmem>>, %arg3: memref<32x1xf32, #tpu.memory_space<vmem>>, %arg4: memref<32x32xbf16, #tpu.memory_space<vmem>>, %arg5: memref<32x1xf32, #tpu.memory_space<vmem>>, %arg6: memref<32x32xbf16, #tpu.memory_space<vmem>>, %arg7: memref<32x1xf32, #tpu.memory_space<vmem>>, %arg8: memref<3x32xbf16, #tpu.memory_space<vmem>>, %arg9: memref<3x1xf32, #tpu.memory_space<vmem>>, %arg10: memref<3x512xf32, #tpu.memory_space<vmem>>, %arg11: memref<16x512xf32, #tpu.memory_space<vmem>>) attributes {dimension_semantics = [#tpu.dimension_semantics<parallel>], iteration_bounds = array<i64: 2>, scalar_prefetch = 0 : i64, scratch_operands = 1 : i64, tpu.core_type = #tpu.core_type<tc>, window_params = [{transform_indices = @transform_0, window_bounds = array<i64: 3, 512>}, {pipeline_mode = #tpu.pipeline_mode<synchronous>, transform_indices = @transform_1, window_bounds = array<i64: 32, 16>}, {pipeline_mode = #tpu.pipeline_mode<synchronous>, transform_indices = @transform_2, window_bounds = array<i64: 32, 1>}, {pipeline_mode = #tpu.pipeline_mode<synchronous>, transform_indices = @transform_3, window_bounds = array<i64: 32, 32>}, {pipeline_mode = #tpu.pipeline_mode<synchronous>, transform_indices = @transform_4, window_bounds = array<i64: 32, 1>}, {pipeline_mode = #tpu.pipeline_mode<synchronous>, transform_indices = @transform_5, window_bounds = array<i64: 32, 32>}, {pipeline_mode = #tpu.pipeline_mode<synchronous>, transform_indices = @transform_6, window_bounds = array<i64: 32, 1>}, {pipeline_mode = #tpu.pipeline_mode<synchronous>, transform_indices = @transform_7, window_bounds = array<i64: 3, 32>}, {pipeline_mode = #tpu.pipeline_mode<synchronous>, transform_indices = @transform_8, window_bounds = array<i64: 3, 1>}, {transform_indices = @transform_9, window_bounds = array<i64: 3, 512>}]} {
    %c0 = arith.constant 0 : index
    %c0_0 = arith.constant 0 : index
    %0 = vector.load %arg1[%c0, %c0_0] : memref<3x512xf32, #tpu.memory_space<vmem>>, vector<3x512xf32>
    %cst = arith.constant 1.000000e+00 : f32
    %1 = vector.broadcast %cst : f32 to vector<3x512xf32>
    %2 = arith.mulf %1, %0 : vector<3x512xf32>
    %3 = math.sin %2 : vector<3x512xf32>
    %c0_1 = arith.constant 0 : index
    %c0_2 = arith.constant 0 : index
    %4 = vector.load %arg11[%c0_1, %c0_2] : memref<16x512xf32, #tpu.memory_space<vmem>>, vector<3x512xf32>
    tpu.vector_store %arg11[%c0_1, %c0_2], %3 {strides = array<i32>} : memref<16x512xf32, #tpu.memory_space<vmem>>, vector<3x512xf32>,
    %5 = math.cos %2 : vector<3x512xf32>
    %c8 = arith.constant 8 : index
    %c0_3 = arith.constant 0 : index
    %6 = vector.load %arg11[%c8, %c0_3] : memref<16x512xf32, #tpu.memory_space<vmem>>, vector<3x512xf32>
    tpu.vector_store %arg11[%c8, %c0_3], %5 {strides = array<i32>} : memref<16x512xf32, #tpu.memory_space<vmem>>, vector<3x512xf32>,
    %cst_4 = arith.constant 4.000000e+00 : f32
    %7 = vector.broadcast %cst_4 : f32 to vector<3x512xf32>
    %8 = arith.mulf %7, %0 : vector<3x512xf32>
    %9 = math.sin %8 : vector<3x512xf32>
    %c3 = arith.constant 3 : index
    %c0_5 = arith.constant 0 : index
    %10 = vector.load %arg11[%c3, %c0_5] : memref<16x512xf32, #tpu.memory_space<vmem>>, vector<3x512xf32>
    tpu.vector_store %arg11[%c3, %c0_5], %9 {strides = array<i32>} : memref<16x512xf32, #tpu.memory_space<vmem>>, vector<3x512xf32>,
    %11 = math.cos %8 : vector<3x512xf32>
    %c11 = arith.constant 11 : index
    %c0_6 = arith.constant 0 : index
    %12 = vector.load %arg11[%c11, %c0_6] : memref<16x512xf32, #tpu.memory_space<vmem>>, vector<3x512xf32>
    tpu.vector_store %arg11[%c11, %c0_6], %11 {strides = array<i32>} : memref<16x512xf32, #tpu.memory_space<vmem>>, vector<3x512xf32>,
    %cst_7 = arith.constant 0.000000e+00 : f32
    %13 = vector.broadcast %cst_7 : f32 to vector<2x512xf32>
    %c6 = arith.constant 6 : index
    %c0_8 = arith.constant 0 : index
    %14 = vector.load %arg11[%c6, %c0_8] : memref<16x512xf32, #tpu.memory_space<vmem>>, vector<2x512xf32>
    tpu.vector_store %arg11[%c6, %c0_8], %13 {strides = array<i32>} : memref<16x512xf32, #tpu.memory_space<vmem>>, vector<2x512xf32>,
    %c14 = arith.constant 14 : index
    %c0_9 = arith.constant 0 : index
    %15 = vector.load %arg11[%c14, %c0_9] : memref<16x512xf32, #tpu.memory_space<vmem>>, vector<2x512xf32>
    tpu.vector_store %arg11[%c14, %c0_9], %13 {strides = array<i32>} : memref<16x512xf32, #tpu.memory_space<vmem>>, vector<2x512xf32>,
    %c0_10 = arith.constant 0 : index
    %c0_11 = arith.constant 0 : index
    %16 = vector.load %arg11[%c0_10, %c0_11] : memref<16x512xf32, #tpu.memory_space<vmem>>, vector<16x512xf32>
    %17 = arith.truncf %16 : vector<16x512xf32> to vector<16x512xbf16>
    %c0_12 = arith.constant 0 : index
    %c0_13 = arith.constant 0 : index
    %18 = vector.load %arg2[%c0_12, %c0_13] : memref<32x16xbf16, #tpu.memory_space<vmem>>, vector<32x16xbf16>
    %cst_14 = arith.constant dense<0.000000e+00> : vector<32x512xf32>
    %19 = tpu.matmul %18, %17, %cst_14 {dimension_numbers = #tpu.dot_dimension_numbers<[1], [0], [0], [1], [0, 0, 1, 1], [], []>} : vector<32x16xbf16>, vector<16x512xbf16>, vector<32x512xf32> -> vector<32x512xf32>
    %c0_15 = arith.constant 0 : index
    %c0_16 = arith.constant 0 : index
    %20 = vector.load %arg3[%c0_15, %c0_16] : memref<32x1xf32, #tpu.memory_space<vmem>>, vector<32x1xf32>
    %21 = vector.broadcast %20 : vector<32x1xf32> to vector<32x512xf32>
    %22 = arith.addf %19, %21 : vector<32x512xf32>
    %cst_17 = arith.constant 0.000000e+00 : f32
    %23 = vector.broadcast %cst_17 : f32 to vector<32x512xf32>
    %24 = arith.maximumf %22, %23 : vector<32x512xf32>
    %25 = arith.truncf %24 : vector<32x512xf32> to vector<32x512xbf16>
    %c0_18 = arith.constant 0 : index
    %c0_19 = arith.constant 0 : index
    %26 = vector.load %arg4[%c0_18, %c0_19] : memref<32x32xbf16, #tpu.memory_space<vmem>>, vector<32x32xbf16>
    %cst_20 = arith.constant dense<0.000000e+00> : vector<32x512xf32>
    %27 = tpu.matmul %26, %25, %cst_20 {dimension_numbers = #tpu.dot_dimension_numbers<[1], [0], [0], [1], [0, 0, 1, 1], [], []>} : vector<32x32xbf16>, vector<32x512xbf16>, vector<32x512xf32> -> vector<32x512xf32>
    %c0_21 = arith.constant 0 : index
    %c0_22 = arith.constant 0 : index
    %28 = vector.load %arg5[%c0_21, %c0_22] : memref<32x1xf32, #tpu.memory_space<vmem>>, vector<32x1xf32>
    %29 = vector.broadcast %28 : vector<32x1xf32> to vector<32x512xf32>
    %30 = arith.addf %27, %29 : vector<32x512xf32>
    %cst_23 = arith.constant 0.000000e+00 : f32
    %31 = vector.broadcast %cst_23 : f32 to vector<32x512xf32>
    %32 = arith.maximumf %30, %31 : vector<32x512xf32>
    %33 = arith.truncf %32 : vector<32x512xf32> to vector<32x512xbf16>
    %c0_24 = arith.constant 0 : index
    %c0_25 = arith.constant 0 : index
    %34 = vector.load %arg6[%c0_24, %c0_25] : memref<32x32xbf16, #tpu.memory_space<vmem>>, vector<32x32xbf16>
    %cst_26 = arith.constant dense<0.000000e+00> : vector<32x512xf32>
    %35 = tpu.matmul %34, %33, %cst_26 {dimension_numbers = #tpu.dot_dimension_numbers<[1], [0], [0], [1], [0, 0, 1, 1], [], []>} : vector<32x32xbf16>, vector<32x512xbf16>, vector<32x512xf32> -> vector<32x512xf32>
    %c0_27 = arith.constant 0 : index
    %c0_28 = arith.constant 0 : index
    %36 = vector.load %arg7[%c0_27, %c0_28] : memref<32x1xf32, #tpu.memory_space<vmem>>, vector<32x1xf32>
    %37 = vector.broadcast %36 : vector<32x1xf32> to vector<32x512xf32>
    %38 = arith.addf %35, %37 : vector<32x512xf32>
    %cst_29 = arith.constant 0.000000e+00 : f32
    %39 = vector.broadcast %cst_29 : f32 to vector<32x512xf32>
    %40 = arith.maximumf %38, %39 : vector<32x512xf32>
    %41 = arith.truncf %40 : vector<32x512xf32> to vector<32x512xbf16>
    %c0_30 = arith.constant 0 : index
    %c0_31 = arith.constant 0 : index
    %42 = vector.load %arg8[%c0_30, %c0_31] : memref<3x32xbf16, #tpu.memory_space<vmem>>, vector<3x32xbf16>
    %cst_32 = arith.constant dense<0.000000e+00> : vector<3x512xf32>
    %43 = tpu.matmul %42, %41, %cst_32 {dimension_numbers = #tpu.dot_dimension_numbers<[1], [0], [0], [1], [0, 0, 1, 1], [], []>} : vector<3x32xbf16>, vector<32x512xbf16>, vector<3x512xf32> -> vector<3x512xf32>
    %c0_33 = arith.constant 0 : index
    %c0_34 = arith.constant 0 : index
    %44 = vector.load %arg9[%c0_33, %c0_34] : memref<3x1xf32, #tpu.memory_space<vmem>>, vector<3x1xf32>
    %45 = vector.broadcast %44 : vector<3x1xf32> to vector<3x512xf32>
    %46 = arith.addf %43, %45 : vector<3x512xf32>
    %c0_35 = arith.constant 0 : index
    %c0_36 = arith.constant 0 : index
    %47 = vector.load %arg10[%c0_35, %c0_36] : memref<3x512xf32, #tpu.memory_space<vmem>>, vector<3x512xf32>
    tpu.vector_store %arg10[%c0_35, %c0_36], %46 {strides = array<i32>} : memref<3x512xf32, #tpu.memory_space<vmem>>, vector<3x512xf32>,
    return
  }
  func.func @transform_0(%arg0: i32) -> (i32, i32) {
    %c0_i32 = arith.constant 0 : i32
    %c0_i32_0 = arith.constant 0 : i32
    return %c0_i32, %arg0 : i32, i32
  }
  func.func @transform_1(%arg0: i32) -> (i32, i32) {
    %c0_i32 = arith.constant 0 : i32
    %c0_i32_0 = arith.constant 0 : i32
    %c0_i32_1 = arith.constant 0 : i32
    return %c0_i32, %c0_i32_0 : i32, i32
  }
  func.func @transform_2(%arg0: i32) -> (i32, i32) {
    %c0_i32 = arith.constant 0 : i32
    %c0_i32_0 = arith.constant 0 : i32
    %c0_i32_1 = arith.constant 0 : i32
    return %c0_i32, %c0_i32_0 : i32, i32
  }
  func.func @transform_3(%arg0: i32) -> (i32, i32) {
    %c0_i32 = arith.constant 0 : i32
    %c0_i32_0 = arith.constant 0 : i32
    %c0_i32_1 = arith.constant 0 : i32
    return %c0_i32, %c0_i32_0 : i32, i32
  }
  func.func @transform_4(%arg0: i32) -> (i32, i32) {
    %c0_i32 = arith.constant 0 : i32
    %c0_i32_0 = arith.constant 0 : i32
    %c0_i32_1 = arith.constant 0 : i32
    return %c0_i32, %c0_i32_0 : i32, i32
  }
  func.func @transform_5(%arg0: i32) -> (i32, i32) {
    %c0_i32 = arith.constant 0 : i32
    %c0_i32_0 = arith.constant 0 : i32
    %c0_i32_1 = arith.constant 0 : i32
    return %c0_i32, %c0_i32_0 : i32, i32
  }
  func.func @transform_6(%arg0: i32) -> (i32, i32) {
    %c0_i32 = arith.constant 0 : i32
    %c0_i32_0 = arith.constant 0 : i32
    %c0_i32_1 = arith.constant 0 : i32
    return %c0_i32, %c0_i32_0 : i32, i32
  }
  func.func @transform_7(%arg0: i32) -> (i32, i32) {
    %c0_i32 = arith.constant 0 : i32
    %c0_i32_0 = arith.constant 0 : i32
    %c0_i32_1 = arith.constant 0 : i32
    return %c0_i32, %c0_i32_0 : i32, i32
  }
  func.func @transform_8(%arg0: i32) -> (i32, i32) {
    %c0_i32 = arith.constant 0 : i32
    %c0_i32_0 = arith.constant 0 : i32
    %c0_i32_1 = arith.constant 0 : i32
    return %c0_i32, %c0_i32_0 : i32, i32
  }
  func.func @transform_9(%arg0: i32) -> (i32, i32) {
    %c0_i32 = arith.constant 0 : i32
    %c0_i32_0 = arith.constant 0 : i32
    return %c0_i32, %arg0 : i32, i32
  }
}

</mosaic_0001>

<bundles_post_ra>
// kernel: tpu_custom_call.1
= control target key start
LH: loop header
LB: loop body
LE: loop exit
PB: predicated region body
PF: predicated region fallthrough
CT: control target
= control target key end

     0   :  { %14 = vsyncpa [#allocation4], 0  ;;  %s2769_s0 = inlined_call_operand.vmem [shape: f32[3,777], index: 0, kind: input, shape index: {}]   ;;  %s2770_s1 = inlined_call_operand.vmem [shape: bf16[32,16], index: 1, kind: input, shape index: {}]   ;;  %s2771_s2 = inlined_call_operand.vmem [shape: f32[32,1], index: 2, kind: input, shape index: {}]   ;;  %s2772_s3 = inlined_call_operand.vmem [shape: bf16[32,32], index: 3, kind: input, shape index: {}]   ;;  %s2773_s4 = inlined_call_operand.vmem [shape: f32[32,1], index: 4, kind: input, shape index: {}]   ;;  %s2774_s5 = inlined_call_operand.vmem [shape: bf16[32,32], index: 5, kind: input, shape index: {}]   ;;  %s2775_s6 = inlined_call_operand.vmem [shape: f32[32,1], index: 6, kind: input, shape index: {}]   ;;  %s2776_s7 = inlined_call_operand.vmem [shape: bf16[3,32], index: 7, kind: input, shape index: {}]   ;;  %s2777_s8 = inlined_call_operand.vmem [shape: f32[3,1], index: 8, kind: input, shape index: {}]   ;;  %s2778_s9 = inlined_call_operand.hbm [shape: f32[3,777], index: 9, kind: output, shape index: {}]  }
   0x1   :  { %16 = vsyncpa [#allocation4 + $0x1], 0  ;;  %s2245_s30 = smov 0   ;;  %s2247_s10 = smov 0  }
   0x2   :  { %s2249_s11 = smov 0   ;;  %s2251_s12 = smov 0  }
   0x3 LB: > { %s2266_s13 = sadd.s32 4294967295, %s2184_s12   ;;  %s1969_s14 = sadd.s32 4294967294, %s2184_s12   ;;  %s2184_s12 = sphi %s2251_s12, %s2790_s12   ;;  %s2180_s11 = sphi %s2249_s11, %s2789_s11   ;;  %s2176_s10 = sphi %s2247_s10, %s2788_s10   ;;  %s2172_s30 = sphi %s2245_s30, %s2787_s30  }
   0x4   : > { %s2270_s15 = sadd.s32 1, %s2184_s12   ;;  %s223_s16 = sadd.s32 1, %s2180_s11 }
   0x5   : > { %s220_s17 = ssub.s32 %s2184_s12, %s2270_s15  ;;  %p233_p0 = scmp.ne.s32.totalorder %s2180_s11, %s2176_s10 }
   0x6   : > { %p221_p1 = scmp.eq.s32.totalorder %s220_s17, 0  ;;  %p234_p2 = scmp.eq.s32.totalorder %s2266_s13, 1 }
   0x7   : > { %p239_p3 = scmp.ne.s32.totalorder %s2176_s10, %s2172_s30  ;;  %p240_p4 = scmp.eq.s32.totalorder %s1969_s14, 1 }
   0x8   : > { %s2281_s18 = scalar_select %p221_p1, %s2180_s11, %s223_s16  }
   0x9   : > { %p2283_p5 = por %p234_p2, %p233_p0  ;;  %p2287_p6 = por %p240_p4, %p239_p3 }
   0xa   : > { %p1972_p7 = scmp.ge.s32.totalorder %s2184_s12, 1  ;;  %p299_p8 = scmp.lt.s32.totalorder %s2184_s12, 3 }
   0xc   : > { %p300_p9 = pnand %p1972_p7, %p299_p8 }
   0xd   : > { %s2294_s21 = sshll.u32 (!%p300_p9), %s2266_s13, 2 }
   0xe   : > { %303 = sbr.rel (%p300_p9) target bundleno = 1077 (0x435), region = 56  ;;  %p344_p10 = scmp.lt.s32.totalorder (!%p300_p9), %s2294_s21, 6 }
  0x13   : > { %v2186_v0 = vmov 0.0   ;;  %s345_s22 = scalar_select %p344_p10, %s2294_s21, 6  ;;  %v2187_v28 = vmov 683565275   ;;  %v2188_v30 = vmov 2475754826  }
  0x14   : > { %1244 = vst [vmem:[#allocation2] sm:$0xc0] %v2186_v0  ;;  %1248 = vst [vmem:[#allocation2 + $0x20] sm:$0xc0] %v2186_v0  ;;  %v2189_v32 = vmov 2131351028  }
  0x15   : > { %1243 = vst [vmem:[#allocation2 + $0x30] sm:$0xc0] %v2186_v0  ;;  %1245 = vst [vmem:[#allocation2 + $0x18] sm:$0xc0] %v2186_v0  ;;  %s1975_s23 = sshll.u32 %s345_s22, 2  ;;  %s1898_s27 = ssub.s32 (%p2283_p5), 7, %s2294_s21 }
  0x16   : > { %1246 = vst [vmem:[#allocation2 + $0x10] sm:$0xc0] %v2186_v0  ;;  %1247 = vst [vmem:[#allocation2 + $0x8] sm:$0xc0] %v2186_v0  ;;  %s347_s26 = scalar_lea.vmem %s2769_s0, %s1975_s23  ;;  %v2190_v34 = vmov 2102212464  }
  0x17   : > { %1249 = vst [vmem:[#allocation2 + $0x28] sm:$0xc0] %v2186_v0  ;;  %1250 = vst [vmem:[#allocation2 + $0x38] sm:$0xc0] %v2186_v0  ;;  %v2301_v1 = vld [vmem:[%s347_s26] sm:$0x77] }
  0x18   : > { %v361_v2 = vand.u32 2147483647, %v2301_v1  ;;  %v364_v3 = vand.u32 2139095040, %v2301_v1  ;;  %v2305_v4 = vld [vmem:[%s347_s26 + $0x8] sm:$0x77]  ;;  %v2308_v5 = vmul.f32 4.0, %v2301_v1 }
  0x19   : > { %v468_v6 = vand.u32 2139095040, %v2305_v4  ;;  %v2191_v36 = vmov 920167782   ;;  %v2192_v43 = vmov 1326507024   ;;  %vm363_vm13 = vcmp.lt.s32.totalorder %v2301_v1, 0 }
  0x1a   : > { %v365_v7 = vshrl.u32 %v364_v3, 23  ;;  %v368_v8 = vand.u32 8388607, %v361_v2  ;;  %v797_v9 = vand.u32 2147483647, %v2308_v5  ;;  %v800_v10 = vand.u32 2139095040, %v2308_v5 }
  0x1b   : > { %v469_v12 = vshrl.u32 %v468_v6, 23  ;;  %vm2415_vm14 = vcmp.le.f32.partialorder %v361_v2, 0.7853982  ;;  %s336_s23 = sand.u32 1, %s2176_s10   ;;  %p1899_p11 = scmp.lt.s32.totalorder (%p2283_p5), %s1898_s27, 4 }
  0x1c   : > { %v1976_v11 = vadd.s32 4294967169, %v365_v7  ;;  %v801_v13 = vshrl.u32 %v800_v10, 23  ;;  %v804_v14 = vand.u32 8388607, %v797_v9  ;;  %v369_v16 = vor.u32 8388608, %v368_v8  ;;  %s1973_s24 = sshll.u32 %s336_s23, 4 }
  0x1d   : > { %v1980_v19 = vadd.s32 4294967169, %v469_v12  ;;  %s338_s25 = scalar_lea.vmem [#allocation3], %s1973_s24  ;;  %s2722_s26 = scalar_lea.sflag [#allocation4], %s336_s23 }
  0x1e   : > { %v371_v15 = vadd.s32 1, %v1976_v11  ;;  %v1992_v17 = vadd.s32 4294967169, %v801_v13  ;;  %v805_v18 = vor.u32 8388608, %v804_v14  ;;  %v2317_v24 = vshll.u32 %v369_v16, 8 }
  0x1f   : > { %v2321_v26 = vadd.s32 1, %v1980_v19 }
  0x20   : > { %vm372_vm0 = vcmp.gt.s32.totalorder %v371_v15, 0  ;;  %v807_v21 = vadd.s32 1, %v1992_v17  ;;  %v2319_v25 = vshll.u32 %v805_v18, 8 }
  0x21   : > { %v373_v20 = vsel %vm372_vm0, %v371_v15, 0  ;;  %vm476_vm8 = vcmp.gt.s32.totalorder %v2321_v26, 0 }
  0x22   : > { %v374_v22 = vshrl.u32 %v373_v20, 5  ;;  %v375_v23 = vand.u32 31, %v373_v20  ;;  %vm808_vm1 = vcmp.gt.s32.totalorder %v807_v21, 0 }
  0x23   : > { %v809_v48 = vsel %vm808_vm1, %v807_v21, 0 }
  0x24   : > { %v376_v27 = vsub.s32 32, %v375_v23  ;;  %v378_v29 = vshll.u32 %v2187_v28, %v375_v23  ;;  %v381_v31 = vshll.u32 %v2188_v30, %v375_v23  ;;  %v384_v33 = vshll.u32 %v2189_v32, %v375_v23 }
  0x25   : > { %v387_v35 = vshll.u32 %v2190_v34, %v375_v23  ;;  %v390_v37 = vshll.u32 %v2191_v36, %v375_v23  ;;  %vm393_vm2 = vcmp.lt.s32.totalorder %v374_v22, 1  ;;  %vm394_vm3 = vcmp.lt.s32.totalorder %v374_v22, 2 }
  0x26   : > { %v377_v38 = vshrl.u32 %v2187_v28, %v376_v27  ;;  %v379_v39 = vshrl.u32 %v2188_v30, %v376_v27  ;;  %v382_v40 = vshrl.u32 %v2189_v32, %v376_v27  ;;  %v385_v41 = vshrl.u32 %v2190_v34, %v376_v27 }
  0x27   : > { %v388_v42 = vshrl.u32 %v2191_v36, %v376_v27  ;;  %v391_v44 = vshrl.u32 %v2192_v43, %v376_v27  ;;  %vm395_vm4 = vcmp.lt.s32.totalorder %v374_v22, 3  ;;  %vm396_vm5 = vcmp.lt.s32.totalorder %v374_v22, 4 }
  0x28   : > { %v380_v45 = vor.u32 %v379_v39, %v378_v29  ;;  %v383_v46 = vor.u32 %v382_v40, %v381_v31  ;;  %v386_v47 = vor.u32 %v385_v41, %v384_v33  ;;  %v810_v51 = vshrl.u32 %v809_v48, 5 }
  0x29   : > { %v389_v49 = vor.u32 %v388_v42, %v387_v35  ;;  %v392_v50 = vor.u32 %v391_v44, %v390_v37  ;;  %v811_v52 = vand.u32 31, %v809_v48 }
  0x2a   : > { %v397_v53 = vsel %vm393_vm2, %v377_v38, %v380_v45  ;;  %v398_v54 = vsel %vm396_vm5, %v386_v47, 2102212464  ;;  %v401_v55 = vsel %vm393_vm2, %v380_v45, %v383_v46  ;;  %v405_v56 = vsel %vm393_vm2, %v383_v46, %v386_v47 }
  0x2b   : > { %v399_v57 = vsel %vm395_vm4, %v383_v46, %v398_v54  ;;  %v402_v58 = vsel %vm396_vm5, %v389_v49, 920167782  ;;  %v406_v59 = vsel %vm396_vm5, %v392_v50, 1326507024  ;;  %v812_v60 = vsub.s32 32, %v811_v52 }
  0x2c   : > { %v400_v61 = vsel %vm394_vm3, %v397_v53, %v399_v57  ;;  %v403_v62 = vsel %vm395_vm4, %v386_v47, %v402_v58  ;;  %v407_v63 = vsel %vm395_vm4, %v389_v49, %v406_v59  ;;  %v814_v0 = vshll.u32 %v2187_v28, %v811_v52 }
  0x2d   : > { %v404_v3 = vsel %vm394_vm3, %v401_v55, %v403_v62  ;;  %v408_v6 = vsel %vm394_vm3, %v405_v56, %v407_v63  ;;  %v416_v7 = vmul.u32 %v2317_v24, %v400_v61  ;;  %v813_v8 = vshrl.u32 %v2187_v28, %v812_v60 }
  0x2e   : > { %v2348_v10 = vmul.u32.u64.low %v2317_v24, %v408_v6  ;;  %v2349_v11 = vmul.u32.u64.high %v2317_v24, %v408_v6, %v2348_v10  ;;  %v2352_v12 = vmul.u32.u64.low %v2317_v24, %v404_v3  ;;  %v2353_v13 = vmul.u32.u64.high %v2317_v24, %v404_v3, %v2352_v12 }
  0x2f   : > { %v815_v14 = vshrl.u32 %v2188_v30, %v812_v60  ;;  %v817_v15 = vshll.u32 %v2188_v30, %v811_v52  ;;  %v818_v16 = vshrl.u32 %v2189_v32, %v812_v60  ;;  %v820_v17 = vshll.u32 %v2189_v32, %v811_v52 }
  0x30   : > { %v821_v18 = vshrl.u32 %v2190_v34, %v812_v60  ;;  %v823_v19 = vshll.u32 %v2190_v34, %v811_v52  ;;  %v824_v20 = vshrl.u32 %v2191_v36, %v812_v60  ;;  %v826_v21 = vshll.u32 %v2191_v36, %v811_v52 }
  0x31   : > { %v816_v22 = vor.u32 %v815_v14, %v814_v0  ;;  %v819_v23 = vor.u32 %v818_v16, %v817_v15  ;;  %v827_v24 = vshrl.u32 %v2192_v43, %v812_v60  ;;  %vm829_vm6 = vcmp.lt.s32.totalorder %v810_v51, 1 }
  0x32   : > { %vm418_vm7 = vc.u32 %v2349_v11, %v2352_v12  ;;  %v419_v27 = vadd.s32 1, %v2353_v13  ;;  %v822_v29 = vor.u32 %v821_v18, %v820_v17  ;;  %v825_v31 = vor.u32 %v824_v20, %v823_v19 }
  0x33   : > { %v828_v33 = vor.u32 %v827_v24, %v826_v21  ;;  %vm830_vm9 = vcmp.lt.s32.totalorder %v810_v51, 2  ;;  %vm831_vm10 = vcmp.lt.s32.totalorder %v810_v51, 3  ;;  %vm832_vm11 = vcmp.lt.s32.totalorder %v810_v51, 4 }
  0x34   : > { %v420_v35 = vsel %vm418_vm7, %v419_v27, %v2353_v13  ;;  %v833_v37 = vsel %vm829_vm6, %v813_v8, %v816_v22  ;;  %v837_v38 = vsel %vm829_vm6, %v816_v22, %v819_v23  ;;  %v834_v40 = vsel %vm832_vm11, %v822_v29, 2102212464 }
  0x35   : > { %v421_v39 = vadd.s32 %v420_v35, %v416_v7  ;;  %v838_v41 = vsel %vm832_vm11, %v825_v31, 920167782  ;;  %v841_v42 = vsel %vm829_vm6, %v819_v23, %v822_v29  ;;  %v835_v44 = vsel %vm831_vm10, %v819_v23, %v834_v40 }
  0x36   : > { %v839_v45 = vsel %vm831_vm10, %v822_v29, %v838_v41  ;;  %v842_v46 = vsel %vm832_vm11, %v828_v33, 1326507024  ;;  %v477_v47 = vsel %vm476_vm8, %v2321_v26, 0  ;;  %v465_v52 = vand.u32 2147483647, %v2305_v4 }
  0x37   : > { %v422_v48 = vadd.s32 536870912, %v421_v39  ;;  %v840_v49 = vsel %vm830_vm9, %v837_v38, %v839_v45  ;;  %v843_v50 = vsel %vm831_vm10, %v825_v31, %v842_v46  ;;  %v836_v53 = vsel %vm830_vm9, %v833_v37, %v835_v44  ;;  %v1444_v37 = vld [vmem:[%s2773_s4 + $0x10] sm:$0xff] }
  0x38   : > { %v844_v54 = vsel %vm830_vm9, %v841_v42, %v843_v50  ;;  %v2381_v55 = vmul.u32.u64.low %v2319_v25, %v840_v49  ;;  %v2382_v56 = vmul.u32.u64.high %v2319_v25, %v840_v49, %v2381_v55  ;;  %v479_v26 = vand.u32 31, %v477_v47 }
  0x39   : > { %v423_v57 = vshrl.u32 %v422_v48, 30  ;;  %v2386_v58 = vmul.u32.u64.low %v2319_v25, %v844_v54  ;;  %v2387_v59 = vmul.u32.u64.high %v2319_v25, %v844_v54, %v2386_v58  ;;  %v852_v61 = vmul.u32 %v2319_v25, %v836_v53 }
  0x3a   : > { %v2391_v62 = vmul.f32 4.0, %v2305_v4  ;;  %v855_v51 = vadd.s32 1, %v2382_v56  ;;  %v480_v63 = vsub.s32 32, %v479_v26  ;;  %v472_v3 = vand.u32 8388607, %v465_v52 }
  0x3b   : > { %v424_v60 = vshll.u32 %v423_v57, 30  ;;  %vm854_vm12 = vc.u32 %v2387_v59, %v2381_v55  ;;  %v491_v25 = vshll.u32 %v2190_v34, %v479_v26  ;;  %v478_v16 = vshrl.u32 %v477_v47, 5 }
  0x3c   : > { %v856_v6 = vsel %vm854_vm12, %v855_v51, %v2382_v56  ;;  %v904_v10 = vand.u32 2139095040, %v2391_v62  ;;  %v492_v13 = vshrl.u32 %v2191_v36, %v480_v63  ;;  %v473_v15 = vor.u32 8388608, %v472_v3 }
  0x3d   : > { %v425_v0 = vsub.s32 %v421_v39, %v424_v60  ;;  %v857_v8 = vadd.s32 %v856_v6, %v852_v61  ;;  %v482_v17 = vshll.u32 %v2187_v28, %v479_v26  ;;  %v483_v19 = vshrl.u32 %v2188_v30, %v480_v63 }
  0x3e   : > { %v485_v20 = vshll.u32 %v2188_v30, %v479_v26  ;;  %v486_v21 = vshrl.u32 %v2189_v32, %v480_v63  ;;  %v488_v23 = vshll.u32 %v2189_v32, %v479_v26  ;;  %v489_v24 = vshrl.u32 %v2190_v34, %v480_v63 }
  0x3f   : > { %v427_v7 = vsub.s32 0, %v425_v0  ;;  %v858_v18 = vadd.s32 536870912, %v857_v8  ;;  %v905_v27 = vshrl.u32 %v904_v10, 23  ;;  %v493_v31 = vor.u32 %v492_v13, %v491_v25 }
  0x40   : > { %v494_v33 = vshll.u32 %v2191_v36, %v479_v26  ;;  %v495_v35 = vshrl.u32 %v2192_v43, %v480_v63  ;;  %v417_v38 = vadd.s32 %v2352_v12, %v2349_v11  ;;  %vm497_vm15 = vcmp.lt.s32.totalorder %v478_v16, 1 }
  0x41   : > { %v1977_v14 = vmin.u32 %v427_v7, %v425_v0  ;;  %v2409_v29 = vshrl.u32 %v858_v18, 30  ;;  %vm500_vm0 = vcmp.lt.s32.totalorder %v478_v16, 4  ;;  %v447_v40 = vsub.s32 4, %v423_v57 }
  0x42   : > { %v484_v42 = vor.u32 %v483_v19, %v482_v17  ;;  %v487_v44 = vor.u32 %v486_v21, %v485_v20  ;;  %v490_v45 = vor.u32 %v489_v24, %v488_v23  ;;  %v496_v46 = vor.u32 %v495_v35, %v494_v33 }
  0x43   : > { %v429_v22 = vclz %v1977_v14  ;;  %v860_v41 = vshll.u32 %v2409_v29, 30  ;;  %vm499_vm2 = vcmp.lt.s32.totalorder %v478_v16, 3  ;;  %v481_v48 = vshrl.u32 %v2187_v28, %v480_v63 }
  0x44   : > { %v506_v49 = vsel %vm500_vm0, %v493_v31, 920167782  ;;  %vm498_vm3 = vcmp.lt.s32.totalorder %v478_v16, 2  ;;  %v448_v53 = vsel %vm363_vm13, %v447_v40, %v423_v57  ;;  %v502_v56 = vsel %vm500_vm0, %v490_v45, 2102212464  ;;  %v1269_v16 = vld [vmem:[%s2771_s2 + $0x10] sm:$0xff] }
  0x45   : > { %v1978_v39 = vadd.s32 4294967294, %v429_v22  ;;  %v2422_v2 = vsub.s32 %v857_v8, %v860_v41  ;;  %v505_v58 = vsel %vm497_vm15, %v484_v42, %v487_v44  ;;  %v507_v61 = vsel %vm499_vm2, %v490_v45, %v506_v49 }
  0x46   : > { %v510_v51 = vsel %vm500_vm0, %v496_v46, 1326507024  ;;  %v509_v3 = vsel %vm497_vm15, %v487_v44, %v490_v45  ;;  %v513_v6 = vshll.u32 %v473_v15, 8  ;;  %v503_v8 = vsel %vm499_vm2, %v487_v44, %v502_v56  ;;  %v1268_v56 = vld [vmem:[%s2771_s2 + $0x8] sm:$0xff] }
  0x47   : > { %vm1979_vm1 = vcmp.lt.s32.totalorder %v1978_v39, 0  ;;  %v863_v54 = vsub.s32 0, %v2422_v2  ;;  %v511_v10 = vsel %vm499_vm2, %v493_v31, %v510_v51  ;;  %v450_v25 = vsel %vm2415_vm14, 0, %v448_v53 }
  0x48   : > { %v432_v47 = vsel %vm1979_vm1, 0, %v1978_v39  ;;  %v508_v14 = vsel %vm498_vm3, %v505_v58, %v507_v61  ;;  %v901_v17 = vand.u32 2147483647, %v2391_v62  ;;  %v512_v20 = vsel %vm498_vm3, %v509_v3, %v511_v10 }
  0x49   : > { %v433_v11 = vsub.s32 32, %v432_v47  ;;  %v434_v12 = vshll.u32 %v425_v0, %v432_v47  ;;  %v437_v50 = vsub.s32 4294967266, %v432_v47  ;;  %v1993_v63 = vmin.u32 %v863_v54, %v2422_v2  ;;  %v1270_v54 = vld [vmem:[%s2771_s2 + $0x18] sm:$0xff] }
  0x4a   : > { %v501_v0 = vsel %vm497_vm15, %v481_v48, %v484_v42  ;;  %v1996_v21 = vadd.s32 4294967169, %v905_v27  ;;  %v2444_v23 = vmul.u32.u64.low %v513_v6, %v512_v20  ;;  %v2445_v24 = vmul.u32.u64.high %v513_v6, %v512_v20, %v2444_v23  ;;  %v1267_v27 = vld [vmem:[%s2771_s2] sm:$0xff]  ;;  %v1445_v20 = vld [vmem:[%s2773_s4 + $0x18] sm:$0xff] }
  0x4b   : > { %v435_v26 = vshrl.u32 %v417_v38, %v433_v11  ;;  %v438_v60 = vadd.s32 127, %v437_v50  ;;  %v865_v13 = vclz %v1993_v63  ;;  %v504_v22 = vsel %vm498_vm3, %v501_v0, %v503_v8 }
  0x4c   : > { %v2447_v33 = vmul.u32.u64.low %v513_v6, %v508_v14  ;;  %v2448_v35 = vmul.u32.u64.high %v513_v6, %v508_v14, %v2447_v33  ;;  %v911_v38 = vadd.s32 1, %v1996_v21  ;;  %v853_v39 = vadd.s32 %v2381_v55, %v2387_v59 }
  0x4d   : > { %v436_v57 = vor.u32 %v435_v26, %v434_v12  ;;  %v439_v7 = vshll.u32 %v438_v60, 23  ;;  %v1994_v15 = vadd.s32 4294967294, %v865_v13  ;;  %v2455_v40 = vand.u32 8388607, %v901_v17 }
  0x4e   : > { %v454_v42 = vadd.s32 3, %v450_v25  ;;  %vm912_vm5 = vcmp.gt.s32.totalorder %v911_v38, 0  ;;  %v2193_v45 = vmov 0   ;;  %v520_v47 = vmul.u32 %v513_v6, %v504_v22 }
  0x4f   : > { %v440_v18 = vor.u32 4788187, %v439_v7  ;;  %v443_v19 = vcvt.s32.f32 %v436_v57  ;;  %vm1995_vm4 = vcmp.lt.s32.totalorder %v1994_v15, 0  ;;  %1340 = vmatprep.mubr.bf16.mxu0 %v2193_v45  ;;  %1393 = vmatprep.mubr.bf16.mxu1 %v2193_v45  ;;  %vm522_vm6 = vc.u32 %v2445_v24, %v2447_v33 }
  0x50   : > { %v868_v44 = vsel %vm1995_vm4, 0, %v1994_v15  ;;  %2100 = vset.pattern.permute.xlu0 %v2193_v45  ;;  %2101 = vset.pattern.permute.xlu1 %v2193_v45  ;;  %v523_v49 = vadd.s32 1, %v2448_v35  ;;  %v913_v11 = vsel %vm912_vm5, %v911_v38, 0  ;;  %v2471_v12 = vand.u32 3, %v450_v25 }
  0x51   : > { %v441_v31 = vand.u32 2147483647, %v440_v18  ;;  %v869_v55 = vsub.s32 32, %v868_v44  ;;  %v870_v59 = vshll.u32 %v2422_v2, %v868_v44  ;;  %v873_v46 = vsub.s32 4294967266, %v868_v44  ;;  %1283 = vperm.xlu0 %2100, %v1269_v16   ;;  %1273 = vperm.xlu1 %2101, %v1267_v27   ;;  %v1442_v27 = vld [vmem:[%s2773_s4] sm:$0xff] }
  0x52   : > { %v915_v2 = vand.u32 31, %v913_v11  ;;  %vm799_vm7 = vcmp.lt.s32.totalorder %v2308_v5, 0  ;;  %v883_v26 = vsub.s32 4, %v2409_v29  ;;  %v524_v60 = vsel %vm522_vm6, %v523_v49, %v2448_v35 }
  0x53   : > { %v444_v41 = vmul.f32 %v443_v19, %v441_v31  ;;  %v871_v50 = vshrl.u32 %v853_v39, %v869_v55  ;;  %v874_v53 = vadd.s32 127, %v873_v46  ;;  %v2484_v61 = vshrl.u32 %v913_v11, 5 }
  0x54   : > { %v525_v3 = vadd.s32 %v524_v60, %v520_v47  ;;  %v916_v6 = vsub.s32 32, %v915_v2  ;;  %v918_v57 = vshll.u32 %v2187_v28, %v915_v2  ;;  %v921_v7 = vshll.u32 %v2188_v30, %v915_v2 }
  0x55   : > { %v445_v48 = vxor.u32 2147483648, %v444_v41  ;;  %v872_v63 = vor.u32 %v871_v50, %v870_v59  ;;  %v875_v0 = vshll.u32 %v874_v53, 23  ;;  %1288 = vperm.xlu0 %2100, %v1270_v54   ;;  %1278 = vperm.xlu1 %2101, %v1268_v56   ;;  %v924_v19 = vshll.u32 %v2189_v32, %v915_v2 }
  0x56   : > { %v526_v25 = vadd.s32 536870912, %v525_v3  ;;  %v917_v13 = vshrl.u32 %v2187_v28, %v916_v6  ;;  %v919_v14 = vshrl.u32 %v2188_v30, %v916_v6  ;;  %v922_v18 = vshrl.u32 %v2189_v32, %v916_v6 }
  0x57   : > { %v446_v58 = vsel %vm363_vm13, %v445_v48, %v444_v41  ;;  %v876_v8 = vor.u32 4788187, %v875_v0  ;;  %v879_v10 = vcvt.s32.f32 %v872_v63  ;;  %v925_v22 = vshrl.u32 %v2190_v34, %v916_v6  ;;  %v1619_v48 = vld [vmem:[%s2775_s6 + $0x10] sm:$0xff]  ;;  %v1617_v63 = vld [vmem:[%s2775_s6] sm:$0xff] }
  0x58   : > { %v449_v51 = vsel %vm2415_vm14, %v2301_v1, %v446_v58  ;;  %v2501_v15 = vshrl.u32 %v526_v25, 30  ;;  %v927_v23 = vshll.u32 %v2190_v34, %v915_v2  ;;  %v920_v31 = vor.u32 %v919_v14, %v918_v57 }
  0x59   : > { %2108 = vcosq.f32 %v449_v51  ;;  %v877_v21 = vand.u32 2147483647, %v876_v8  ;;  %v923_v35 = vor.u32 %v922_v18, %v921_v7  ;;  %v928_v28 = vshrl.u32 %v2191_v36, %v916_v6  ;;  %1458 = vperm.xlu0 %2100, %v1444_v37   ;;  %1463 = vperm.xlu1 %2101, %v1445_v20   ;;  %v1618_v8 = vld [vmem:[%s2775_s6 + $0x8] sm:$0xff] }
  0x5a   : > { %2110 = vsinq.f32 %v449_v51  ;;  %v930_v30 = vshll.u32 %v2191_v36, %v915_v2  ;;  %v2507_v38 = vand.u32 3, %v454_v42  ;;  %v528_v39 = vshll.u32 %v2501_v15, 30  ;;  %v1443_v42 = vld [vmem:[%s2773_s4 + $0x8] sm:$0xff] }
  0x5b   : > { %v880_v32 = vmul.f32 %v879_v10, %v877_v21  ;;  %v926_v16 = vor.u32 %v925_v22, %v924_v19  ;;  %vm674_vm8 = vcmp.eq.s32.totalorder %v2471_v12, 0  ;;  %vm2516_vm9 = vcmp.le.f32.partialorder %v797_v9, 0.7853982 }
  0x5c   : > { %v929_v36 = vor.u32 %v928_v28, %v927_v23  ;;  %v931_v41 = vshrl.u32 %v2192_v43, %v916_v6  ;;  %vm673_vm10 = vcmp.lt.s32.totalorder %v2471_v12, 2  ;;  %v884_v55 = vsel %vm799_vm7, %v883_v26, %v2409_v29 }
  0x5d   : > { %v881_v44 = vxor.u32 2147483648, %v880_v32  ;;  %v2528_v59 = vsub.s32 %v525_v3, %v528_v39  ;;  %vm933_vm11 = vcmp.lt.s32.totalorder %v2484_v61, 1  ;;  %vm453_vm12 = vweird.f32 %v2301_v1  ;;  %1448 = vperm.xlu0 %2100, %v1442_v27   ;;  %1453 = vperm.xlu1 %2101, %v1443_v42  }
  0x5e   : > { %vm677_vm13 = vcmp.eq.s32.totalorder %v2471_v12, 2  ;;  %v932_v9 = vor.u32 %v931_v41, %v930_v30  ;;  %vm936_vm14 = vcmp.lt.s32.totalorder %v2484_v61, 4  ;;  %v937_v43 = vsel %vm933_vm11, %v917_v13, %v920_v31 }
  0x5f   : > { %vm456_vm15 = vcmp.lt.s32.totalorder %v2507_v38, 2  ;;  %v882_v29 = vsel %vm799_vm7, %v881_v44, %v880_v32  ;;  %v531_v46 = vsub.s32 0, %v2528_v59  ;;  %v909_v47 = vor.u32 8388608, %v2455_v40  ;;  %v1620_v40 = vld [vmem:[%s2775_s6 + $0x18] sm:$0xff] }
  0x60   : > { %v885_v49 = vsel %vm2516_vm9, %v2308_v5, %v882_v29  ;;  %v886_v11 = vsel %vm2516_vm9, 0, %v884_v55  ;;  %v938_v50 = vsel %vm936_vm14, %v926_v16, 2102212464  ;;  %v941_v53 = vsel %vm933_vm11, %v920_v31, %v923_v35  ;;  %v1788_v31 = vld [vmem:[%s2777_s8] sm:$0x7] }
  0x61   : > { %2112 = vcosq.f32 %v885_v49  ;;  %v1981_v2 = vmin.u32 %v531_v46, %v2528_v59  ;;  %vm935_vm0 = vcmp.lt.s32.totalorder %v2484_v61, 3  ;;  %v942_v54 = vsel %vm936_vm14, %v929_v36, 920167782  ;;  %1633 = vperm.xlu0 %2100, %v1619_v48   ;;  %1638 = vperm.xlu1 %2101, %v1620_v40  }
  0x62   : > { %vm457_vm1 = vcmp.eq.s32.totalorder %v2507_v38, 0  ;;  %2114 = vsinq.f32 %v885_v49  ;;  %vm934_vm2 = vcmp.lt.s32.totalorder %v2484_v61, 2  ;;  %v939_v56 = vsel %vm935_vm0, %v923_v35, %v938_v50 }
  0x63   : > { %vm460_vm3 = vcmp.eq.s32.totalorder %v2507_v38, 2  ;;  %v890_v26 = vadd.s32 3, %v886_v11  ;;  %v533_v60 = vclz %v1981_v2  ;;  %v2565_v51 = vshll.u32 %v909_v47, 8 }
  0x64   : > { %v2572_v6 = vsel %vm934_vm2, %v937_v43, %v939_v56  ;;  %v943_v57 = vsel %vm935_vm0, %v926_v16, %v942_v54  ;;  %v945_v7 = vsel %vm933_vm11, %v923_v35, %v926_v16  ;;  %v946_v13 = vsel %vm936_vm14, %v932_v9, 1326507024 }
  0x65   : > { %v1982_v25 = vadd.s32 4294967294, %v533_v60  ;;  %v944_v37 = vsel %vm934_vm2, %v941_v53, %v943_v57  ;;  %v521_v19 = vadd.s32 %v2447_v33, %v2445_v24  ;;  %v947_v20 = vsel %vm935_vm0, %v929_v36, %v946_v13  ;;  %1623 = vperm.xlu0 %2100, %v1617_v63   ;;  %1628 = vperm.xlu1 %2101, %v1618_v8  }
  0x66   : > { %v2109_v58 = vpop.eup %2108  ;;  %v948_v23 = vsel %vm934_vm2, %v945_v7, %v947_v20  ;;  %v1114_v35 = vand.u32 3, %v886_v11  ;;  %v891_v34 = vand.u32 3, %v890_v26  ;;  %v956_v46 = vmul.u32 %v2565_v51, %v2572_v6 }
  0x67   : > { %v2111_v0 = vpop.eup %2110  ;;  %v461_v3 = vxor.u32 2147483648, %v2109_v58  ;;  %vm1983_vm4 = vcmp.lt.s32.totalorder %v1982_v25, 0  ;;  %v2612_v36 = vmul.u32.u64.low %v2565_v51, %v948_v23  ;;  %v2613_v41 = vmul.u32.u64.high %v2565_v51, %v948_v23, %v2612_v36 }
  0x68   : > { %v458_v10 = vxor.u32 2147483648, %v2111_v0  ;;  %v536_v28 = vsel %vm1983_vm4, 0, %v1982_v25  ;;  %v2616_v1 = vmul.u32.u64.low %v2565_v51, %v944_v37  ;;  %v2617_v44 = vmul.u32.u64.high %v2565_v51, %v944_v37, %v2616_v1 }
  0x69   : > { %v462_v14 = vsel %vm460_vm3, %v461_v3, %v2111_v0  ;;  %v679_v18 = vsel %vm677_vm13, %v461_v3, %v2111_v0  ;;  %v537_v32 = vsub.s32 32, %v536_v28  ;;  %v538_v39 = vshll.u32 %v2528_v59, %v536_v28  ;;  %1791 = vperm.xlu0 %2100, %v1788_v31  }
  0x6a   : > { %v459_v21 = vsel %vm457_vm1, %v2109_v58, %v458_v10  ;;  %v676_v22 = vsel %vm674_vm8, %v2109_v58, %v458_v10  ;;  %v541_v38 = vsub.s32 4294967266, %v536_v28  ;;  %vm1115_vm5 = vcmp.lt.s32.totalorder %v1114_v35, 2 }
  0x6b   : > { %v463_v24 = vsel %vm456_vm15, %v459_v21, %v462_v14  ;;  %v680_v33 = vsel %vm673_vm10, %v676_v22, %v679_v18  ;;  %v539_v12 = vshrl.u32 %v521_v19, %v537_v32  ;;  %vm1116_vm6 = vcmp.eq.s32.totalorder %v1114_v35, 0 }
  0x6c   : > { %v464_v30 = vsel %vm453_vm12, nan, %v463_v24  ;;  %v681_v61 = vsel %vm453_vm12, nan, %v680_v33  ;;  %v542_v42 = vadd.s32 127, %v541_v38  ;;  %vm1119_vm7 = vcmp.eq.s32.totalorder %v1114_v35, 2  ;;  %v2657_v38 = vld [vmem:[%s2770_s1] sm:$0xff]  }
  0x6d   : > { %v571_v16 = vcombine.high %v464_v30, %v464_v30  ;;  %v787_v27 = vcombine.high %v681_v61, %v681_v61  ;;  %575 = vst [vmem:[#allocation2 + $0x30] sm:$0x7] %v464_v30  ;;  %791 = vst [vmem:[#allocation2 + $0x8] sm:$0x7] %v681_v61  ;;  %v540_v55 = vor.u32 %v539_v12, %v538_v39  ;;  %vm892_vm8 = vcmp.lt.s32.totalorder %v891_v34, 2 }
  0x6e   : > { %v2113_v59 = vpop.eup %2112  ;;  %vm893_vm9 = vcmp.eq.s32.totalorder %v891_v34, 0  ;;  %vm896_vm10 = vcmp.eq.s32.totalorder %v891_v34, 2  ;;  %v543_v9 = vshll.u32 %v542_v42, 23  ;;  %v2622_v47 = vadd.s32 %v2616_v1, %v2613_v41 }
  0x6f   : > { %576 = vst [vmem:[#allocation2] sm:$0x7] %v571_v16  ;;  %792 = vst [vmem:[#allocation2 + $0x20] sm:$0x7] %v787_v27  ;;  %v2115_v43 = vpop.eup %2114  ;;  %v897_v29 = vxor.u32 2147483648, %v2113_v59  ;;  %vm958_vm11 = vc.u32 %v2613_v41, %v2616_v1  ;;  %v547_v11 = vcvt.s32.f32 %v540_v55  ;;  %v959_v50 = vadd.s32 1, %v2617_v44 }
  0x70   : > { %v894_v48 = vxor.u32 2147483648, %v2115_v43  ;;  %v544_v49 = vor.u32 4788187, %v543_v9  ;;  %vm889_vm12 = vweird.f32 %v2308_v5  ;;  %vm467_vm13 = vcmp.lt.s32.totalorder %v2305_v4, 0 }
  0x71   : > { %v898_v53 = vsel %vm896_vm10, %v897_v29, %v2115_v43  ;;  %v1121_v40 = vsel %vm1119_vm7, %v897_v29, %v2115_v43  ;;  %v960_v58 = vsel %vm958_vm11, %v959_v50, %v2617_v44  ;;  %v551_v3 = vsub.s32 4, %v2501_v15 }
  0x72   : > { %v895_v2 = vsel %vm893_vm9, %v2113_v59, %v894_v48  ;;  %v1118_v54 = vsel %vm1116_vm6, %v2113_v59, %v894_v48  ;;  %v545_v56 = vand.u32 2147483647, %v544_v49  ;;  %v961_v51 = vadd.s32 %v960_v58, %v956_v46 }
  0x73   : > { %v899_v26 = vsel %vm892_vm8, %v895_v2, %v898_v53  ;;  %v1122_v60 = vsel %vm1115_vm5, %v1118_v54, %v1121_v40  ;;  %vm2637_vm14 = vcmp.le.f32.partialorder %v465_v52, 0.7853982  ;;  %v552_v52 = vsel %vm467_vm13, %v551_v3, %v2501_v15  ;;  %v2669_v53 = vld [vmem:[%s2770_s1 + $0x8] sm:$0xff]  }
  0x74   : > { %v900_v63 = vsel %vm889_vm12, nan, %v899_v26  ;;  %v1123_v0 = vsel %vm889_vm12, nan, %v1122_v60  ;;  %v548_v5 = vmul.f32 %v547_v11, %v545_v56  ;;  %v962_v7 = vadd.s32 536870912, %v961_v51 }
  0x75   : > { %v1007_v6 = vcombine.high %v900_v63, %v900_v63  ;;  %v1229_v57 = vcombine.high %v1123_v0, %v1123_v0  ;;  %v1009_v8 = vrot.slane %v900_v63, 5  ;;  %v1231_v37 = vrot.slane %v1123_v0, 5 }
  0x76   : > { %v549_v25 = vxor.u32 2147483648, %v548_v5  ;;  %v2641_v18 = vshrl.u32 %v962_v7, 30  ;;  %v554_v23 = vsel %vm2637_vm14, 0, %v552_v52  ;;  %vm1301_vm15 = vcmask 130048  }
  0x77   : > { %v1010_v13 = vrot.slane %v1007_v6, 5  ;;  %v1232_v14 = vrot.slane %v1229_v57, 5  ;;  %1017 = vst [vmem:[#allocation2 + $0x30] sm:$0x38] %v1009_v8  ;;  %1239 = vst [vmem:[#allocation2 + $0x8] sm:$0x38] %v1231_v37  ;;  %vm557_vm7 = vweird.f32 %v2305_v4 }
  0x78   : > { %v550_v19 = vsel %vm467_vm13, %v549_v25, %v548_v5  ;;  %v964_v21 = vshll.u32 %v2641_v18, 30  ;;  %v558_v33 = vadd.s32 3, %v554_v23  ;;  %v775_v16 = vand.u32 3, %v554_v23 }
  0x79   : > { %1018 = vst [vmem:[#allocation2] sm:$0x38] %v1010_v13  ;;  %1240 = vst [vmem:[#allocation2 + $0x20] sm:$0x38] %v1232_v14  ;;  %v553_v20 = vsel %vm2637_vm14, %v2305_v4, %v550_v19  ;;  %vm903_vm8 = vcmp.lt.s32.totalorder %v2391_v62, 0  ;;  %v987_v63 = vsub.s32 4, %v2641_v18 }
  0x7a   : > { %2116 = vcosq.f32 %v553_v20  ;;  %v965_v22 = vsub.s32 %v961_v51, %v964_v21  ;;  %v559_v27 = vand.u32 3, %v558_v33  ;;  %vm780_vm1 = vcmp.eq.s32.totalorder %v775_v16, 2 }
  0x7b   : > { %2118 = vsinq.f32 %v553_v20  ;;  %vm776_vm4 = vcmp.lt.s32.totalorder %v775_v16, 2  ;;  %vm777_vm5 = vcmp.eq.s32.totalorder %v775_v16, 0  ;;  %vm902_vm9 = vcmp.le.f32.partialorder %v901_v17, 0.7853982 }
  0x7c   : > { %v967_v31 = vsub.s32 0, %v965_v22  ;;  %vm564_vm2 = vcmp.eq.s32.totalorder %v559_v27, 2  ;;  %vm561_vm3 = vcmp.eq.s32.totalorder %v559_v27, 0  ;;  %vm560_vm6 = vcmp.lt.s32.totalorder %v559_v27, 2 }
  0x7d   : > { %v988_v3 = vsel %vm903_vm8, %v987_v63, %v2641_v18 }
  0x7e   : > { %v1251_v24 = vld [vmem:[#allocation2 + $0x30] sm:$0xff]  ;;  %v1997_v35 = vmin.u32 %v967_v31, %v965_v22  ;;  %v1255_v28 = vld [vmem:[#allocation2 + $0x8] sm:$0xff]  ;;  %v990_v57 = vsel %vm902_vm9, 0, %v988_v3 }
  0x7f   : > { %v1259_v15 = vpack.c.bf16 %v1255_v28, %v1251_v24  ;;  %v994_v7 = vadd.s32 3, %v990_v57  ;;  %v1217_v10 = vand.u32 3, %v990_v57  ;;  %v2105_v3 = vld [vmem:[%s2772_s3 + $0x8] sm:$0xff]  }
  0x80   : > { %v1252_v30 = vld [vmem:[#allocation2] sm:$0xff]  ;;  %v969_v39 = vclz %v1997_v35 }
  0x81   : > { %v1256_v61 = vld [vmem:[#allocation2 + $0x20] sm:$0xff]  ;;  %v995_v8 = vand.u32 3, %v994_v7  ;;  %vm1222_vm11 = vcmp.eq.s32.totalorder %v1217_v10, 2  ;;  %vm1219_vm13 = vcmp.eq.s32.totalorder %v1217_v10, 0 }
  0x82   : > { %v1260_v32 = vpack.c.bf16 %v1256_v61, %v1252_v30  ;;  %v1998_v34 = vadd.s32 4294967294, %v969_v39 }
  0x83   : > { %vm1000_vm10 = vcmp.eq.s32.totalorder %v995_v8, 2  ;;  %vm997_vm12 = vcmp.eq.s32.totalorder %v995_v8, 0  ;;  %vm996_vm14 = vcmp.lt.s32.totalorder %v995_v8, 2 }
  0x84   : > { %1322 = vmatprep.subr.bf16.mxu0 %v1260_v32  ;;  %vm1999_vm0 = vcmp.lt.s32.totalorder %v1998_v34, 0 }
  0x85   : > { %1323 = vmatpush1.bf16.msra.mxu0 %v1259_v15  ;;  %v972_v12 = vsel %vm1999_vm0, 0, %v1998_v34  ;;  %vm1218_vm0 = vcmp.lt.s32.totalorder %v1217_v10, 2 }
  0x86   : > { %v973_v41 = vsub.s32 32, %v972_v12  ;;  %v974_v42 = vshll.u32 %v965_v22, %v972_v12  ;;  %v977_v1 = vsub.s32 4294967266, %v972_v12 }
  0x87   : > { %v2117_v36 = vpop.eup %2116 }
  0x88   : > { %2010 = vmatmul.mubr.msk.bf16.vlgmr.msra.gmra.mxu0 %vm1301_vm15, %v2657_v38  ;;  %v2119_v44 = vpop.eup %2118  ;;  %v565_v55 = vxor.u32 2147483648, %v2117_v36  ;;  %v975_v9 = vshrl.u32 %v2622_v47, %v973_v41  ;;  %v978_v43 = vadd.s32 127, %v977_v1 }
  0x89   : > { %1350 = vmatprep.mubr.bf16.mxu0 %v2193_v45  ;;  %v562_v59 = vxor.u32 2147483648, %v2119_v44 }
  0x8a   : > { %v566_v29 = vsel %vm564_vm2, %v565_v55, %v2119_v44  ;;  %v782_v46 = vsel %vm780_vm1, %v565_v55, %v2119_v44  ;;  %v976_v11 = vor.u32 %v975_v9, %v974_v42  ;;  %v979_v50 = vshll.u32 %v978_v43, 23 }
  0x8b   : > { %v563_v48 = vsel %vm561_vm3, %v2117_v36, %v562_v59  ;;  %v779_v49 = vsel %vm777_vm5, %v2117_v36, %v562_v59  ;;  %vm993_vm1 = vweird.f32 %v2391_v62 }
  0x8c   : > { %v567_v40 = vsel %vm560_vm6, %v563_v48, %v566_v29  ;;  %v783_v2 = vsel %vm776_vm4, %v779_v49, %v782_v46  ;;  %v980_v56 = vor.u32 4788187, %v979_v50  ;;  %v983_v4 = vcvt.s32.f32 %v976_v11 }
  0x8d   : > { %v568_v47 = vsel %vm557_vm7, nan, %v567_v40  ;;  %v784_v54 = vsel %vm557_vm7, nan, %v783_v2 }
  0x8e   : > { %v572_v58 = vcombine.high %v568_v47, %v568_v47  ;;  %v788_v26 = vcombine.high %v784_v54, %v784_v54  ;;  %577 = vst [vmem:[#allocation2 + $0x18] sm:$0x7] %v568_v47  ;;  %793 = vst [vmem:[#allocation2 + $0x28] sm:$0x7] %v784_v54  ;;  %v981_v60 = vand.u32 2147483647, %v980_v56 }
  0x90   : > { %2011 = vmatmul.mubr.msk.bf16.gmra.mxu0 %vm1301_vm15, %v2669_v53  ;;  %578 = vst [vmem:[#allocation2 + $0x10] sm:$0x7] %v572_v58  ;;  %794 = vst [vmem:[#allocation2 + $0x38] sm:$0x7] %v788_v26  ;;  %v984_v51 = vmul.f32 %v983_v4, %v981_v60 }
  0x91   : > { %1515 = vmatprep.mubr.bf16.mxu0 %v2193_v45 }
  0x92   : > { %v985_v0 = vxor.u32 2147483648, %v984_v51 }
  0x94   : > { %v986_v5 = vsel %vm903_vm8, %v985_v0, %v984_v51 }
  0x95   : > { %v989_v6 = vsel %vm902_vm9, %v2391_v62, %v986_v5  ;;  %v2104_v5 = vld [vmem:[%s2772_s3] sm:$0xff]  }
  0x96   : > { %2120 = vcosq.f32 %v989_v6 }
  0x97   : > { %2122 = vsinq.f32 %v989_v6 }
  0xa3   : > { %v2121_v25 = vpop.eup %2120 }
  0xa4   : > { %v2123_v37 = vpop.eup %2122  ;;  %v1001_v13 = vxor.u32 2147483648, %v2121_v25 }
  0xa5   : > { %v998_v17 = vxor.u32 2147483648, %v2123_v37 }
  0xa6   : > { %v1002_v14 = vsel %vm1000_vm10, %v1001_v13, %v2123_v37  ;;  %v1224_v18 = vsel %vm1222_vm11, %v1001_v13, %v2123_v37 }
  0xa7   : > { %v999_v19 = vsel %vm997_vm12, %v2121_v25, %v998_v17  ;;  %v1221_v52 = vsel %vm1219_vm13, %v2121_v25, %v998_v17 }
  0xa8   : > { %v1003_v20 = vsel %vm996_vm14, %v999_v19, %v1002_v14  ;;  %v1225_v21 = vsel %vm1218_vm0, %v1221_v52, %v1224_v18 }
  0xa9   : > { %v1004_v22 = vsel %vm993_vm1, nan, %v1003_v20  ;;  %v1226_v23 = vsel %vm993_vm1, nan, %v1225_v21 }
  0xaa   : > { %v1008_v31 = vcombine.high %v1004_v22, %v1004_v22  ;;  %v1230_v24 = vcombine.high %v1226_v23, %v1226_v23  ;;  %v1011_v33 = vrot.slane %v1004_v22, 5  ;;  %v1233_v35 = vrot.slane %v1226_v23, 5 }
  0xac   : > { %v1012_v28 = vrot.slane %v1008_v31, 5  ;;  %v1234_v30 = vrot.slane %v1230_v24, 5  ;;  %1019 = vst [vmem:[#allocation2 + $0x18] sm:$0x38] %v1011_v33  ;;  %1241 = vst [vmem:[#allocation2 + $0x28] sm:$0x38] %v1233_v35 }
  0xae   : > { %1020 = vst [vmem:[#allocation2 + $0x10] sm:$0x38] %v1012_v28  ;;  %1242 = vst [vmem:[#allocation2 + $0x38] sm:$0x38] %v1234_v30 }
  0xb3   : > { %v1253_v61 = vld [vmem:[#allocation2 + $0x18] sm:$0xff]  ;;  %v1257_v62 = vld [vmem:[#allocation2 + $0x28] sm:$0xff] }
  0xb4   : > { %v1261_v39 = vpack.c.bf16 %v1257_v62, %v1253_v61 }
  0xb5   : > { %v1254_v15 = vld [vmem:[#allocation2 + $0x10] sm:$0xff]  ;;  %v1258_v32 = vld [vmem:[#allocation2 + $0x38] sm:$0xff] }
  0xb6   : > { %v1262_v16 = vpack.c.bf16 %v1258_v32, %v1254_v15 }
  0xb8   : > { %1375 = vmatprep.subr.bf16.mxu1 %v1262_v16 }
  0xb9   : > { %1376 = vmatpush1.bf16.msra.mxu1 %v1261_v39 }
  0xbc   : > { %2012 = vmatmul.mubr.msk.bf16.vlgmr.msra.gmra.mxu1 %vm1301_vm15, %v2657_v38 }
  0xbd   : > { %1403 = vmatprep.mubr.bf16.mxu1 %v2193_v45 }
  0xc4   : > { %2013 = vmatmul.mubr.msk.bf16.gmra.mxu1 %vm1301_vm15, %v2669_v53  ;;  %vm1476_vm15 = vcmask 261120  }
  0xc5   : > { %1568 = vmatprep.mubr.bf16.mxu1 %v2193_v45 }
  0xcc   : > { %v1284_v36 = vpop.permute.xlu0 %1283  ;;  %v1274_v41 = vpop.permute.xlu1 %1273 }
  0xd0   : > { %v1289_v55 = vpop.permute.xlu0 %1288  ;;  %v1279_v59 = vpop.permute.xlu1 %1278 }
 0x148   : > { %v1342_v27 = vpop.f32.mrf.mxu0 }
 0x149   : > { %v1343_v54 = vadd.f32 %v1342_v27, %v1274_v41 }
 0x14a   : > { %v1344_v34 = vpop.f32.mrf.mxu0 }
 0x14b   : > { %v1345_v49 = vadd.f32 %v1344_v34, %v1274_v41  ;;  %v1414_v63 = vmax.f32 %v1343_v54, 0.0 }
 0x14c   : > { %v1346_v12 = vpop.f32.mrf.mxu0 }
 0x14d   : > { %v1347_v50 = vadd.f32 %v1346_v12, %v1279_v59  ;;  %v1415_v4 = vmax.f32 %v1345_v49, 0.0  ;;  %v1464_v12 = vpop.permute.xlu1 %1463 }
 0x14e   : > { %v1348_v42 = vpop.f32.mrf.mxu0 }
 0x14f   : > { %v1349_v43 = vadd.f32 %v1348_v42, %v1279_v59  ;;  %v1418_v26 = vmax.f32 %v1347_v50, 0.0 }
 0x150   : > { %v1352_v1 = vpop.f32.mrf.mxu0 }
 0x151   : > { %v1353_v46 = vadd.f32 %v1352_v1, %v1284_v36  ;;  %v1419_v40 = vmax.f32 %v1349_v43, 0.0  ;;  %v1430_v0 = vpack.c.bf16 %v1418_v26, %v1414_v63 }
 0x152   : > { %v1354_v44 = vpop.f32.mrf.mxu0 }
 0x153   : > { %v1355_v38 = vadd.f32 %v1354_v44, %v1284_v36  ;;  %v1422_v56 = vmax.f32 %v1353_v46, 0.0  ;;  %v1431_v51 = vpack.c.bf16 %v1419_v40, %v1415_v4  ;;  %v1454_v44 = vpop.permute.xlu1 %1453 }
 0x154   : > { %v1356_v9 = vpop.f32.mrf.mxu0 }
 0x155   : > { %v1357_v29 = vadd.f32 %v1356_v9, %v1289_v55  ;;  %v1423_v2 = vmax.f32 %v1355_v38, 0.0 }
 0x156   : > { %v1358_v48 = vpop.f32.mrf.mxu0 }
 0x157   : > { %v1359_v11 = vadd.f32 %v1358_v48, %v1289_v55  ;;  %v1426_v53 = vmax.f32 %v1357_v29, 0.0 }
 0x159   : > { %v1427_v47 = vmax.f32 %v1359_v11, 0.0  ;;  %v1434_v60 = vpack.c.bf16 %v1426_v53, %v1422_v56 }
 0x15b   : > { %v1435_v58 = vpack.c.bf16 %v1427_v47, %v1423_v2 }
 0x15d   : > { %1495 = vmatprep.subr.bf16.mxu0 %v1435_v58 }
 0x15e   : > { %1496 = vmatpush1.bf16.msra.mxu0 %v1434_v60 }
 0x15f   : > { %1497 = vmatprep.subr.bf16.mxu0 %v1431_v51 }
 0x162   : > { %1498 = vmatpush1.bf16.msra.mxu0 %v1430_v0  ;;  %v2106_v0 = vld [vmem:[%s2774_s5] sm:$0xff]  }
 0x165   : > { %2016 = vmatmul.mubr.msk.bf16.vlgmr.msra.gmra.mxu0 %vm1476_vm15, %v2104_v5 }
 0x166   : > { %1525 = vmatprep.mubr.bf16.mxu0 %v2193_v45 }
 0x16d   : > { %2017 = vmatmul.mubr.msk.bf16.gmra.mxu0 %vm1476_vm15, %v2105_v3 }
 0x16e   : > { %1689 = vmatprep.mubr.bf16.mxu0 %v2193_v45 }
 0x17c   : > { %v1395_v6 = vpop.f32.mrf.mxu1 }
 0x17d   : > { %v1396_v33 = vadd.f32 %v1395_v6, %v1274_v41 }
 0x17e   : > { %v1397_v57 = vpop.f32.mrf.mxu1 }
 0x17f   : > { %v1398_v52 = vadd.f32 %v1397_v57, %v1274_v41  ;;  %v1416_v32 = vmax.f32 %v1396_v33, 0.0  ;;  %v1459_v41 = vpop.permute.xlu0 %1458 }
 0x180   : > { %v1399_v7 = vpop.f32.mrf.mxu1 }
 0x181   : > { %v1400_v21 = vadd.f32 %v1399_v7, %v1279_v59  ;;  %v1417_v28 = vmax.f32 %v1398_v52, 0.0 }
 0x182   : > { %v1401_v8 = vpop.f32.mrf.mxu1 }
 0x183   : > { %v1402_v13 = vadd.f32 %v1401_v8, %v1279_v59  ;;  %v1420_v61 = vmax.f32 %v1400_v21, 0.0  ;;  %v1449_v38 = vpop.permute.xlu0 %1448 }
 0x184   : > { %v1405_v10 = vpop.f32.mrf.mxu1 }
 0x185   : > { %v1406_v18 = vadd.f32 %v1405_v10, %v1284_v36  ;;  %v1421_v23 = vmax.f32 %v1402_v13, 0.0  ;;  %v1432_v39 = vpack.c.bf16 %v1420_v61, %v1416_v32 }
 0x186   : > { %v1407_v25 = vpop.f32.mrf.mxu1 }
 0x187   : > { %v1408_v17 = vadd.f32 %v1407_v25, %v1284_v36  ;;  %v1424_v35 = vmax.f32 %v1406_v18, 0.0  ;;  %v1433_v15 = vpack.c.bf16 %v1421_v23, %v1417_v28 }
 0x188   : > { %v1409_v37 = vpop.f32.mrf.mxu1 }
 0x189   : > { %v1410_v14 = vadd.f32 %v1409_v37, %v1289_v55  ;;  %v1425_v31 = vmax.f32 %v1408_v17, 0.0 }
 0x18a   : > { %v1411_v19 = vpop.f32.mrf.mxu1 }
 0x18b   : > { %v1412_v20 = vadd.f32 %v1411_v19, %v1289_v55  ;;  %v1428_v22 = vmax.f32 %v1410_v14, 0.0 }
 0x18d   : > { %v1429_v24 = vmax.f32 %v1412_v20, 0.0  ;;  %v1436_v62 = vpack.c.bf16 %v1428_v22, %v1424_v35 }
 0x18f   : > { %v1437_v30 = vpack.c.bf16 %v1429_v24, %v1425_v31 }
 0x191   : > { %1548 = vmatprep.subr.bf16.mxu1 %v1437_v30 }
 0x192   : > { %1549 = vmatpush1.bf16.msra.mxu1 %v1436_v62 }
 0x193   : > { %1550 = vmatprep.subr.bf16.mxu1 %v1433_v15 }
 0x196   : > { %1551 = vmatpush1.bf16.msra.mxu1 %v1432_v39 }
 0x199   : > { %2018 = vmatmul.mubr.msk.bf16.vlgmr.msra.gmra.mxu1 %vm1476_vm15, %v2104_v5  ;;  %v2107_v5 = vld [vmem:[%s2774_s5 + $0x8] sm:$0xff]  }
 0x19a   : > { %1578 = vmatprep.mubr.bf16.mxu1 %v2193_v45 }
 0x1a1   : > { %2019 = vmatmul.mubr.msk.bf16.gmra.mxu1 %vm1476_vm15, %v2105_v3 }
 0x1a2   : > { %1742 = vmatprep.mubr.bf16.mxu1 %v2193_v45 }
 0x225   : > { %v1517_v16 = vpop.f32.mrf.mxu0 }
 0x226   : > { %v1518_v47 = vadd.f32 %v1517_v16, %v1449_v38 }
 0x227   : > { %v1519_v27 = vpop.f32.mrf.mxu0 }
 0x228   : > { %v1520_v48 = vadd.f32 %v1519_v27, %v1449_v38  ;;  %v1589_v51 = vmax.f32 %v1518_v47, 0.0 }
 0x229   : > { %v1521_v34 = vpop.f32.mrf.mxu0 }
 0x22a   : > { %v1522_v11 = vadd.f32 %v1521_v34, %v1454_v44  ;;  %v1590_v56 = vmax.f32 %v1520_v48, 0.0  ;;  %v1639_v34 = vpop.permute.xlu1 %1638 }
 0x22b   : > { %v1523_v36 = vpop.f32.mrf.mxu0 }
 0x22c   : > { %v1524_v59 = vadd.f32 %v1523_v36, %v1454_v44  ;;  %v1593_v58 = vmax.f32 %v1522_v11, 0.0  ;;  %v1634_v36 = vpop.permute.xlu0 %1633 }
 0x22d   : > { %v1527_v42 = vpop.f32.mrf.mxu0 }
 0x22e   : > { %v1528_v29 = vadd.f32 %v1527_v42, %v1459_v41  ;;  %v1594_v53 = vmax.f32 %v1524_v59, 0.0  ;;  %v1605_v63 = vpack.c.bf16 %v1593_v58, %v1589_v51  ;;  %v1787_v51 = vld [vmem:[%s2776_s7] sm:$0x3] }
 0x22f   : > { %v1529_v1 = vpop.f32.mrf.mxu0 }
 0x230   : > { %v1530_v9 = vadd.f32 %v1529_v1, %v1459_v41  ;;  %v1597_v54 = vmax.f32 %v1528_v29, 0.0  ;;  %v1606_v60 = vpack.c.bf16 %v1594_v53, %v1590_v56  ;;  %v1629_v1 = vpop.permute.xlu1 %1628 }
 0x231   : > { %v1531_v55 = vpop.f32.mrf.mxu0 }
 0x232   : > { %v1532_v43 = vadd.f32 %v1531_v55, %v1464_v12  ;;  %v1598_v40 = vmax.f32 %v1530_v9, 0.0 }
 0x233   : > { %v1533_v46 = vpop.f32.mrf.mxu0 }
 0x234   : > { %v1534_v49 = vadd.f32 %v1533_v46, %v1464_v12  ;;  %v1601_v50 = vmax.f32 %v1532_v43, 0.0  ;;  %v1624_v43 = vpop.permute.xlu0 %1623 }
 0x236   : > { %v1602_v2 = vmax.f32 %v1534_v49, 0.0  ;;  %v1609_v26 = vpack.c.bf16 %v1601_v50, %v1597_v54 }
 0x238   : > { %v1610_v4 = vpack.c.bf16 %v1602_v2, %v1598_v40 }
 0x23a   : > { %1669 = vmatprep.subr.bf16.mxu0 %v1610_v4 }
 0x23b   : > { %1670 = vmatpush1.bf16.msra.mxu0 %v1609_v26 }
 0x23c   : > { %1671 = vmatprep.subr.bf16.mxu0 %v1606_v60 }
 0x23f   : > { %1672 = vmatpush1.bf16.msra.mxu0 %v1605_v63 }
 0x242   : > { %2022 = vmatmul.mubr.msk.bf16.vlgmr.msra.gmra.mxu0 %vm1476_vm15, %v2106_v0 }
 0x243   : > { %1699 = vmatprep.mubr.bf16.mxu0 %v2193_v45 }
 0x24a   : > { %2023 = vmatmul.mubr.msk.bf16.gmra.mxu0 %vm1476_vm15, %v2107_v5 }
 0x24b   : > { %1829 = vmatprep.mubr.bf16.mxu0 %v2193_v45 }
 0x259   : > { %v1570_v3 = vpop.f32.mrf.mxu1 }
 0x25a   : > { %v1571_v24 = vadd.f32 %v1570_v3, %v1449_v38 }
 0x25b   : > { %v1572_v6 = vpop.f32.mrf.mxu1 }
 0x25c   : > { %v1573_v19 = vadd.f32 %v1572_v6, %v1449_v38  ;;  %v1591_v15 = vmax.f32 %v1571_v24, 0.0 }
 0x25d   : > { %v1574_v57 = vpop.f32.mrf.mxu1 }
 0x25e   : > { %v1575_v20 = vadd.f32 %v1574_v57, %v1454_v44  ;;  %v1592_v35 = vmax.f32 %v1573_v19, 0.0 }
 0x25f   : > { %v1576_v7 = vpop.f32.mrf.mxu1 }
 0x260   : > { %v1577_v37 = vadd.f32 %v1576_v7, %v1454_v44  ;;  %v1595_v30 = vmax.f32 %v1575_v20, 0.0 }
 0x261   : > { %v1580_v8 = vpop.f32.mrf.mxu1 }
 0x262   : > { %v1581_v14 = vadd.f32 %v1580_v8, %v1459_v41  ;;  %v1596_v22 = vmax.f32 %v1577_v37, 0.0  ;;  %v1607_v32 = vpack.c.bf16 %v1595_v30, %v1591_v15  ;;  %v1792_v15 = vpop.permute.xlu0 %1791 }
 0x263   : > { %v1582_v10 = vpop.f32.mrf.mxu1 }
 0x264   : > { %v1583_v13 = vadd.f32 %v1582_v10, %v1459_v41  ;;  %v1599_v33 = vmax.f32 %v1581_v14, 0.0  ;;  %v1608_v62 = vpack.c.bf16 %v1596_v22, %v1592_v35 }
 0x265   : > { %v1584_v25 = vpop.f32.mrf.mxu1 }
 0x266   : > { %v1585_v17 = vadd.f32 %v1584_v25, %v1464_v12  ;;  %v1600_v23 = vmax.f32 %v1583_v13, 0.0 }
 0x267   : > { %v1586_v18 = vpop.f32.mrf.mxu1 }
 0x268   : > { %v1587_v52 = vadd.f32 %v1586_v18, %v1464_v12  ;;  %v1603_v21 = vmax.f32 %v1585_v17, 0.0 }
 0x26a   : > { %v1604_v31 = vmax.f32 %v1587_v52, 0.0  ;;  %v1611_v61 = vpack.c.bf16 %v1603_v21, %v1599_v33 }
 0x26c   : > { %v1612_v28 = vpack.c.bf16 %v1604_v31, %v1600_v23 }
 0x26e   : > { %1722 = vmatprep.subr.bf16.mxu1 %v1612_v28 }
 0x26f   : > { %1723 = vmatpush1.bf16.msra.mxu1 %v1611_v61 }
 0x270   : > { %1724 = vmatprep.subr.bf16.mxu1 %v1608_v62 }
 0x273   : > { %1725 = vmatpush1.bf16.msra.mxu1 %v1607_v32 }
 0x276   : > { %2024 = vmatmul.mubr.msk.bf16.vlgmr.msra.gmra.mxu1 %vm1476_vm15, %v2106_v0 }
 0x277   : > { %1752 = vmatprep.mubr.bf16.mxu1 %v2193_v45 }
 0x27e   : > { %2025 = vmatmul.mubr.msk.bf16.gmra.mxu1 %vm1476_vm15, %v2107_v5 }
 0x27f   : > { %1870 = vmatprep.mubr.bf16.mxu1 %v2193_v45 }
 0x302   : > { %v1691_v39 = vpop.f32.mrf.mxu0 }
 0x303   : > { %v1692_v40 = vadd.f32 %v1691_v39, %v1624_v43 }
 0x304   : > { %v1693_v16 = vpop.f32.mrf.mxu0 }
 0x305   : > { %v1694_v46 = vadd.f32 %v1693_v16, %v1624_v43  ;;  %v1763_v26 = vmax.f32 %v1692_v40, 0.0 }
 0x306   : > { %v1695_v27 = vpop.f32.mrf.mxu0 }
 0x307   : > { %v1696_v49 = vadd.f32 %v1695_v27, %v1629_v1  ;;  %v1764_v47 = vmax.f32 %v1694_v46, 0.0 }
 0x308   : > { %v1697_v12 = vpop.f32.mrf.mxu0 }
 0x309   : > { %v1698_v55 = vadd.f32 %v1697_v12, %v1629_v1  ;;  %v1767_v56 = vmax.f32 %v1696_v49, 0.0 }
 0x30a   : > { %v1701_v41 = vpop.f32.mrf.mxu0 }
 0x30b   : > { %v1702_v38 = vadd.f32 %v1701_v41, %v1634_v36  ;;  %v1768_v11 = vmax.f32 %v1698_v55, 0.0  ;;  %v1779_v60 = vpack.c.bf16 %v1767_v56, %v1763_v26 }
 0x30c   : > { %v1703_v42 = vpop.f32.mrf.mxu0 }
 0x30d   : > { %v1704_v59 = vadd.f32 %v1703_v42, %v1634_v36  ;;  %v1771_v2 = vmax.f32 %v1702_v38, 0.0  ;;  %v1780_v58 = vpack.c.bf16 %v1768_v11, %v1764_v47 }
 0x30e   : > { %v1705_v44 = vpop.f32.mrf.mxu0 }
 0x30f   : > { %v1706_v9 = vadd.f32 %v1705_v44, %v1639_v34  ;;  %v1772_v50 = vmax.f32 %v1704_v59, 0.0 }
 0x310   : > { %v1707_v29 = vpop.f32.mrf.mxu0 }
 0x311   : > { %v1708_v48 = vadd.f32 %v1707_v29, %v1639_v34  ;;  %v1775_v45 = vmax.f32 %v1706_v9, 0.0 }
 0x313   : > { %v1776_v53 = vmax.f32 %v1708_v48, 0.0  ;;  %v1783_v4 = vpack.c.bf16 %v1775_v45, %v1771_v2 }
 0x315   : > { %v1784_v54 = vpack.c.bf16 %v1776_v53, %v1772_v50 }
 0x317   : > { %1809 = vmatprep.subr.bf16.mxu0 %v1784_v54 }
 0x318   : > { %1810 = vmatpush1.bf16.msra.mxu0 %v1783_v4 }
 0x319   : > { %1811 = vmatprep.subr.bf16.mxu0 %v1780_v58 }
 0x31c   : > { %1812 = vmatpush1.bf16.msra.mxu0 %v1779_v60 }
 0x31f   : > { %2026 = vmatmul.mubr.msk.bf16.vlgmr.msra.gmra.mxu0 %vm1476_vm15, %v1787_v51 }
 0x336   : > { %v1744_v63 = vpop.f32.mrf.mxu1 }
 0x337   : > { %v1745_v22 = vadd.f32 %v1744_v63, %v1624_v43 }
 0x338   : > { %v1746_v0 = vpop.f32.mrf.mxu1 }
 0x339   : > { %v1747_v17 = vadd.f32 %v1746_v0, %v1624_v43  ;;  %v1765_v30 = vmax.f32 %v1745_v22, 0.0 }
 0x33a   : > { %v1748_v5 = vpop.f32.mrf.mxu1 }
 0x33b   : > { %v1749_v18 = vadd.f32 %v1748_v5, %v1629_v1  ;;  %v1766_v31 = vmax.f32 %v1747_v17, 0.0 }
 0x33c   : > { %v1750_v3 = vpop.f32.mrf.mxu1 }
 0x33d   : > { %v1751_v8 = vadd.f32 %v1750_v3, %v1629_v1  ;;  %v1769_v33 = vmax.f32 %v1749_v18, 0.0 }
 0x33e   : > { %v1754_v6 = vpop.f32.mrf.mxu1 }
 0x33f   : > { %v1755_v37 = vadd.f32 %v1754_v6, %v1634_v36  ;;  %v1770_v52 = vmax.f32 %v1751_v8, 0.0  ;;  %v1781_v61 = vpack.c.bf16 %v1769_v33, %v1765_v30 }
 0x340   : > { %v1756_v57 = vpop.f32.mrf.mxu1 }
 0x341   : > { %v1757_v10 = vadd.f32 %v1756_v57, %v1634_v36  ;;  %v1773_v23 = vmax.f32 %v1755_v37, 0.0  ;;  %v1782_v28 = vpack.c.bf16 %v1770_v52, %v1766_v31 }
 0x342   : > { %v1758_v7 = vpop.f32.mrf.mxu1 }
 0x343   : > { %v1759_v25 = vadd.f32 %v1758_v7, %v1639_v34  ;;  %v1774_v20 = vmax.f32 %v1757_v10, 0.0 }
 0x344   : > { %v1760_v13 = vpop.f32.mrf.mxu1 }
 0x345   : > { %v1761_v14 = vadd.f32 %v1760_v13, %v1639_v34  ;;  %v1777_v19 = vmax.f32 %v1759_v25, 0.0 }
 0x347   : > { %v1778_v21 = vmax.f32 %v1761_v14, 0.0  ;;  %v1785_v35 = vpack.c.bf16 %v1777_v19, %v1773_v23 }
 0x349   : > { %v1786_v24 = vpack.c.bf16 %v1778_v21, %v1774_v20 }
 0x34b   : > { %1850 = vmatprep.subr.bf16.mxu1 %v1786_v24 }
 0x34c   : > { %1851 = vmatpush1.bf16.msra.mxu1 %v1785_v35 }
 0x34d   : > { %1852 = vmatprep.subr.bf16.mxu1 %v1782_v28 }
 0x350   : > { %1853 = vmatpush1.bf16.msra.mxu1 %v1781_v61 }
 0x353   : > { %2027 = vmatmul.mubr.msk.bf16.vlgmr.msra.gmra.mxu1 %vm1476_vm15, %v1787_v51 }
 0x3df   : > { %v1831_v62 = vpop.f32.mrf.mxu0 }
 0x3e0   : > { %v1832_v39 = vadd.f32 %v1831_v62, %v1792_v15 }
 0x3e1   : > { %v1833_v32 = vpop.f32.mrf.mxu0 }
 0x3e2   : > { %v1834_v16 = vadd.f32 %v1833_v32, %v1792_v15 }
 0x3e3   : > { %v1835_v27 = vpop.f32.mrf.mxu0 }
 0x3e4   : > { %v1883_v34 = vcombine.low %v1832_v39, %v1834_v16 }
 0x3e5   : > { %v1836_v12 = vpop.f32.mrf.mxu0 }
 0x3e6   : > { %1887 = vst [vmem:[%s338_s25] sm:$0x77] %v1883_v34 }
 0x413   : > { %v1872_v36 = vpop.f32.mrf.mxu1 }
 0x414   : > { %v1873_v42 = vadd.f32 %v1872_v36, %v1792_v15 }
 0x415   : > { %v1874_v41 = vpop.f32.mrf.mxu1 }
 0x416   : > { %v1875_v1 = vadd.f32 %v1874_v41, %v1792_v15  ;;  %1896 = sbr.rel (!%p2283_p5) target bundleno = 1077 (0x435), region = 60 }
 0x417   : > { %v1876_v44 = vpop.f32.mrf.mxu1 }
 0x418   : > { %v1884_v55 = vcombine.low %v1873_v42, %v1875_v1 }
 0x419   : > { %v1877_v59 = vpop.f32.mrf.mxu1 }
 0x41a   : > { %1888 = vst [vmem:[%s338_s25 + $0x8] sm:$0x77] %v1884_v55 }
 0x41b   : > { %s2792_s27 = smov (!%p1899_p11, %s1898_s27), 4 }
 0x41c   : > { %s2727_s28 = sshll.u32 %s2792_s27, 6 }
 0x41d   : > { %s1903_s29 = ssub.s32 256, %s2727_s28 }
 0x41e   : > { %1904 = vsyncadd %s2722_s26, %s1903_s29  ;;  %p2031_p12 = scmp.ne.s32.totalorder %s2727_s28, 0  ;;  %s2037_s14 = sshll.u32 %s2266_s13, 8 }
 0x41f   : > { %s1907_s19 = scalar_lea.hbm %s2778_s9, %s2037_s14  ;;  %s1910_s22 = sshll.u32 %s338_s25, 4  ;;  %s1911_s22 = int_to_ptr.vmem [resolvable:$true] %s1910_s22 }
 0x420   : > { %s2124_s21 = scalar_lea.vmem %s1911_s22, %s2727_s28  ;;  %s2194_s23 = smov [#allocation3]  }
 0x421   : > { %p2125_p13 = scmp.ne.s32.totalorder %s1911_s22, %s2124_s21  ;;  %s2128_s24 = sshll.u32 %s2194_s23, 4  ;;  %s2129_s24 = int_to_ptr.vmem [resolvable:$false] %s2128_s24 }
 0x422   : > { %s2130_s27 = scalar_lea.vmem %s2129_s24, 512  ;;  %p2131_p2 = scmp.lt.s32.totalorder %s1911_s22, %s2129_s24 }
 0x423   : > { %p2126_p0 = pnand %p2125_p13, %p2031_p12  ;;  %p2132_p3 = scmp.lt.s32.totalorder %s2130_s27, %s2124_s21 }
 0x425   : > { %p2127_p1 = pneg %p2126_p0  ;;  %p2133_p4 = por %p2132_p3, %p2131_p2 }
 0x427   : > { %p2134_p5 = pnand %p2133_p4, %p2127_p1 }
 0x429   : > { %2137 = shalt.err (!%p2134_p5)
}
 0x42a   : > { %s2138_s13 = scalar_lea.hbm %s1907_s19, %s2727_s28  ;;  %s2142_s14 = scalar_lea.hbm %s2778_s9, 448 }
 0x42b   : > { %p2139_p7 = scmp.ne.s32.totalorder %s1907_s19, %s2138_s13  ;;  %p2143_p10 = scmp.lt.s32.totalorder %s1907_s19, %s2778_s9 }
 0x42c   : > { %p2144_p11 = scmp.lt.s32.totalorder %s2142_s14, %s2138_s13 }
 0x42d   : > { %p2140_p8 = pnand %p2139_p7, %p2031_p12 }
 0x42e   : > { %p2145_p13 = por %p2144_p11, %p2143_p10 }
 0x42f   : > { %p2141_p9 = pneg %p2140_p8 }
 0x431   : > { %p2146_p0 = pnand %p2145_p13, %p2141_p9 }
 0x433   : > { %2149 = shalt.err (!%p2146_p0)
}
 0x434   : > { %1913 = dma.vmem_to_hbm [thread:$0]  (%p2031_p12), %s1911_s22, %s2727_s28, %s1907_s19, %s2722_s26  }
 0x435 PF: > { %p2059_p1 = scmp.ge.s32.totalorder %s2184_s12, 2  ;;  %s1922_s21 = sand.u32 1, %s2172_s30  }
 0x436   : > { %s1923_s23 = scalar_lea.sflag [#allocation4], %s1922_s21 }
 0x437   : > { %p2056_p2 = pnand %p2059_p1, %p2287_p6 }
 0x439   : > { %p2057_p3 = pneg %p2056_p2 }
 0x43b   : > { %2167 = dma.done.wait (%p2057_p3), %s1923_s23, 256  }
 0x43c   : > { %2169 = vsyncadd (%p2057_p3), %s1923_s23, 4294967040  ;;  %p19_p4 = scmp.ge.s32.totalorder %s2270_s15, 4   ;;  %s2787_s30 = smov %s2176_s10 }
 0x43d   : > { %s2788_s10 = smov %s2180_s11  ;;  %s2789_s11 = smov %s2281_s18 }
 0x43e   : > { %s2790_s12 = smov %s2270_s15  ;;  %21 = sbr.rel (!%p19_p4) target bundleno = 3 (0x3), region = 91 }
 0x443   :  { %1928 = vsyncpa [#allocation4], 1 }
 0x444   :  { %1930 = vsyncpa [#allocation4 + $0x1], 1 }

</bundles_post_ra>
